<compile_context>
chip_gen: v7x
topology: tpu7x:2x2x1
jax: 0.10.0
libtpu: 0.0.40
codegen_flags: <defaults>
</compile_context>

<pallas_src>
import functools

import jax
import jax.numpy as jnp
from jax.experimental import pallas as pl
from jax.experimental.pallas import tpu as pltpu  # noqa: F401  (imported per convention)


# ---------------------------------------------------------------------------
# Fused per-layer GATConv kernel
# ---------------------------------------------------------------------------
def _gat_layer_kernel(adj_ref, h_ref, w_ref, al_ref, ar_ref, *rest,
                      num_heads, out_f, negative_slope, has_residual,
                      activation, head_mean):
    if has_residual:
        res_w_ref, o_ref = rest
    else:
        (o_ref,) = rest

    x = h_ref[...]                                                  # (N, Din)
    # fc projection, all heads at once (lane-dense [N, H*F] slab on the MXU).
    featp = jnp.dot(x, w_ref[...], preferred_element_type=jnp.float32)

    adj = adj_ref[...]                                              # (N_dst, N_src)
    edge = adj > 0.0

    # Attention logits via MXU (no cross-lane sum reductions, no transpose):
    #   er_all[:, h] = featp_h . attn_r[h]      -> (N, H)  (dst term, column form)
    #   el_all[h, :] = attn_l[h] . featp_h      -> (H, N)  (src term, already lane-major)
    # ar_ref is the block-diagonal (H*F, H) matrix; al_ref is the block-row (H, H*F).
    er_all = jnp.dot(featp, ar_ref[...], preferred_element_type=jnp.float32)
    el_all = jax.lax.dot_general(
        al_ref[...], featp, (((1,), (1,)), ((), ())),
        preferred_element_type=jnp.float32)

    mean_acc = None
    for hh in range(num_heads):                                     # H is 1-2: static unroll
        lo, hi = hh * out_f, (hh + 1) * out_f

        s = er_all[:, hh:hh + 1] + el_all[hh:hh + 1, :]             # (N_dst, N_src) logits
        s = jnp.where(s > 0, s, negative_slope * s)                 # leaky relu
        s = jnp.where(edge, s, -1e30)                               # mask non-edges
        m = jnp.max(s, axis=-1, keepdims=True)
        p = jnp.where(edge, jnp.exp(s - m), 0.0)                    # masked edge softmax
        denom = jnp.maximum(jnp.sum(p, axis=-1, keepdims=True), 1e-20)  # zero-degree guard
        alpha = p / denom

        fp_h = featp[:, lo:hi]                                      # (N, F) this head
        out_h = jnp.dot(alpha, fp_h, preferred_element_type=jnp.float32)

        if has_residual:
            out_h = out_h + jnp.dot(x, res_w_ref[:, lo:hi],
                                    preferred_element_type=jnp.float32)
        if activation:
            out_h = jnp.where(out_h > 0, out_h,
                              jnp.exp(jnp.minimum(out_h, 0.0)) - 1.0)  # ELU

        if head_mean:
            mean_acc = out_h if mean_acc is None else mean_acc + out_h
        else:
            o_ref[:, lo:hi] = out_h

    if head_mean:
        o_ref[...] = mean_acc * (1.0 / num_heads)


def _attn_block_rows(attn, num_heads, out_f):
    """(H, 1, F) attention vector -> (H, H*F) block-row matrix.

    Row h holds attn[h] in columns [h*F, (h+1)*F) and zeros elsewhere, so a
    single MXU matmul computes all per-head attention scores at once.
    """
    a = attn.reshape(num_heads, out_f).astype(jnp.float32)
    eye = jnp.eye(num_heads, dtype=jnp.float32)
    return (eye[:, :, None] * a[None, :, :]).reshape(num_heads, num_heads * out_f)


def gat_conv(adj, h, layer_params, *, negative_slope, residual, activation,
             head_mean=False):
    """One fused GATConv layer. Returns a flat lane-dense (N, H*F) slab
    (or (N, F) if head_mean)."""
    attn_l = layer_params["attn_l"]                                 # (H, 1, F)
    attn_r = layer_params["attn_r"]                                 # (H, 1, F)
    num_heads, _, out_f = attn_l.shape
    n, din = h.shape
    hf = num_heads * out_f

    almat = _attn_block_rows(attn_l, num_heads, out_f)              # (H, H*F)
    armat = _attn_block_rows(attn_r, num_heads, out_f).T            # (H*F, H)

    inputs = [adj.astype(jnp.float32), h.astype(jnp.float32),
              layer_params["fc"].astype(jnp.float32), almat, armat]
    in_specs = [
        pl.BlockSpec((n, n), lambda i: (0, 0)),
        pl.BlockSpec((n, din), lambda i: (0, 0)),
        pl.BlockSpec((din, hf), lambda i: (0, 0)),
        pl.BlockSpec((num_heads, hf), lambda i: (0, 0)),
        pl.BlockSpec((hf, num_heads), lambda i: (0, 0)),
    ]

    if residual:
        if "res_fc" in layer_params:
            res_w = layer_params["res_fc"].astype(jnp.float32)       # (Din, H*F)
        elif din == hf:
            res_w = jnp.eye(din, dtype=jnp.float32)                  # identity residual
        else:  # broadcast a single-head residual across heads (din == out_f)
            res_w = jnp.tile(jnp.eye(out_f, dtype=jnp.float32), (1, num_heads))
        inputs.append(res_w)
        in_specs.append(pl.BlockSpec(res_w.shape, lambda i: (0, 0)))

    out_w = out_f if head_mean else hf
    kern = functools.partial(
        _gat_layer_kernel, num_heads=num_heads, out_f=out_f,
        negative_slope=negative_slope, has_residual=residual,
        activation=activation, head_mean=head_mean)

    return pl.pallas_call(
        kern,
        out_shape=jax.ShapeDtypeStruct((n, out_w), jnp.float32),
        grid=(1,),
        in_specs=in_specs,
        out_specs=pl.BlockSpec((n, out_w), lambda i: (0, 0)),
    )(*inputs)


# ---------------------------------------------------------------------------
# Fused MLP head: output0 -> ReLU -> output1 -> ReLU in one kernel
# ---------------------------------------------------------------------------
def _mlp_head_kernel(x_ref, w0_ref, b0_ref, w1_ref, b1_ref, o_ref):
    h0 = jnp.dot(x_ref[...], w0_ref[...], preferred_element_type=jnp.float32)
    h0 = jnp.maximum(h0 + b0_ref[...], 0.0)
    h1 = jnp.dot(h0, w1_ref[...], preferred_element_type=jnp.float32)
    o_ref[...] = jnp.maximum(h1 + b1_ref[...], 0.0)


def mlp_head(x, w0, b0, w1, b1):
    n, din = x.shape
    d0 = w0.shape[1]
    d1 = w1.shape[1]
    return pl.pallas_call(
        _mlp_head_kernel,
        out_shape=jax.ShapeDtypeStruct((n, d1), jnp.float32),
        grid=(1,),
        in_specs=[
            pl.BlockSpec((n, din), lambda i: (0, 0)),
            pl.BlockSpec((din, d0), lambda i: (0, 0)),
            pl.BlockSpec((1, d0), lambda i: (0, 0)),
            pl.BlockSpec((d0, d1), lambda i: (0, 0)),
            pl.BlockSpec((1, d1), lambda i: (0, 0)),
        ],
        out_specs=pl.BlockSpec((n, d1), lambda i: (0, 0)),
    )(x.astype(jnp.float32), w0.astype(jnp.float32),
      b0.reshape(1, d0).astype(jnp.float32),
      w1.astype(jnp.float32), b1.reshape(1, d1).astype(jnp.float32))


# ---------------------------------------------------------------------------
# GAT2 forward (matches the PyTorch module's eval-mode semantics)
# ---------------------------------------------------------------------------
def gat2_forward(adj, x, params, *, negative_slope=0.2):
    layers = params["layers"]
    num_layers = len(layers) - 1

    h = gat_conv(adj, x, layers[0], negative_slope=negative_slope,
                 residual=False, activation=True)                   # (N, H0*F) flat
    slabs = [h]
    for l in range(num_layers - 1):
        h = gat_conv(adj, h, layers[l + 1], negative_slope=negative_slope,
                     residual=False, activation=True)
        slabs.append(h)

    feat = gat_conv(adj, h, layers[-1], negative_slope=negative_slope,
                    residual=True, activation=True, head_mean=True)  # (N, F) head-mean

    features = jnp.concatenate(slabs + [feat], axis=1)               # single concat
    return mlp_head(features, params["out0_w"], params["out0_b"],
                    params["out1_w"], params["out1_b"])


# ---------------------------------------------------------------------------
# Deterministic parameter / input construction
# ---------------------------------------------------------------------------
def init_params(key, in_dim, num_hidden, out_dim, num_layers, heads):
    def nxt():
        nonlocal key
        key, sub = jax.random.split(key)
        return sub

    def glorot(shape):
        fan_in, fan_out = shape[-2], shape[-1]
        lim = (6.0 / (fan_in + fan_out)) ** 0.5
        return jax.random.uniform(nxt(), shape, jnp.float32, -lim, lim)

    layers = []
    dims_in = [in_dim] + [num_hidden * heads[l] for l in range(num_layers)]
    for l in range(num_layers + 1):
        h = heads[l]
        layer = {
            "fc": glorot((dims_in[l], h * num_hidden)),
            "attn_l": glorot((h, 1, num_hidden)),
            "attn_r": glorot((h, 1, num_hidden)),
        }
        is_last = l == num_layers
        if is_last and dims_in[l] != h * num_hidden:
            layer["res_fc"] = glorot((dims_in[l], h * num_hidden))
        layers.append(layer)

    return {
        "layers": layers,
        "out0_w": glorot(((num_layers + 1) * num_hidden, out_dim)),
        "out0_b": jnp.zeros((out_dim,), jnp.float32),
        "out1_w": glorot((out_dim, 1)),
        "out1_b": jnp.zeros((1,), jnp.float32),
    }


def ring_graph(n):
    eye = jnp.eye(n, dtype=jnp.float32)
    adj = eye + jnp.roll(eye, 1, axis=1) + jnp.roll(eye, -1, axis=1)  # self-loop + ring
    return jnp.clip(adj, 0.0, 1.0)


if __name__ == "__main__":
    # small config: 32 nodes, in_dim=16, num_hidden=32, out_dim=8, 2 GAT layers + final layer
    N, IN_DIM, NUM_HIDDEN, OUT_DIM = 32, 16, 32, 8
    NUM_LAYERS = 2
    HEADS = [1, 1, 2]           # heads for layer0, layer1, final layer

    key = jax.random.PRNGKey(0)
    key, k_in = jax.random.split(key)
    x = jax.random.normal(k_in, (N, IN_DIM), jnp.float32)
    adj = ring_graph(N)
    params = init_params(key, IN_DIM, NUM_HIDDEN, OUT_DIM, NUM_LAYERS, HEADS)

    fwd = jax.jit(functools.partial(gat2_forward, negative_slope=0.2))
    out = fwd(adj, x, params)
    out = jax.block_until_ready(out)
    assert out.shape == (N, 1)
    print("KERNEL_OK")
</pallas_src>

<mosaic_0001>
module attributes {stable_mosaic.version = 11 : i64} {
  func.func @_gat_layer_kernel(%arg0: i32, %arg1: memref<32x32xf32, #tpu.memory_space<vmem>>, %arg2: memref<32x16xf32, #tpu.memory_space<vmem>>, %arg3: memref<16x32xf32, #tpu.memory_space<vmem>>, %arg4: memref<1x32xf32, #tpu.memory_space<vmem>>, %arg5: memref<32x1xf32, #tpu.memory_space<vmem>>, %arg6: memref<32x32xf32, #tpu.memory_space<vmem>>) attributes {dimension_semantics = [#tpu.dimension_semantics<arbitrary>], iteration_bounds = array<i64: 1>, scalar_prefetch = 0 : i64, scratch_operands = 0 : i64, tpu.core_type = #tpu.core_type<tc>, window_params = [{pipeline_mode = #tpu.pipeline_mode<synchronous>, transform_indices = @transform_0, window_bounds = array<i64: 32, 32>}, {pipeline_mode = #tpu.pipeline_mode<synchronous>, transform_indices = @transform_1, window_bounds = array<i64: 32, 16>}, {pipeline_mode = #tpu.pipeline_mode<synchronous>, transform_indices = @transform_2, window_bounds = array<i64: 16, 32>}, {pipeline_mode = #tpu.pipeline_mode<synchronous>, transform_indices = @transform_3, window_bounds = array<i64: 1, 32>}, {pipeline_mode = #tpu.pipeline_mode<synchronous>, transform_indices = @transform_4, window_bounds = array<i64: 32, 1>}, {pipeline_mode = #tpu.pipeline_mode<synchronous>, transform_indices = @transform_5, window_bounds = array<i64: 32, 32>}]} {
    %c0 = arith.constant 0 : index
    %c0_0 = arith.constant 0 : index
    %0 = vector.load %arg2[%c0, %c0_0] : memref<32x16xf32, #tpu.memory_space<vmem>>, vector<32x16xf32>
    %c0_1 = arith.constant 0 : index
    %c0_2 = arith.constant 0 : index
    %1 = vector.load %arg3[%c0_1, %c0_2] : memref<16x32xf32, #tpu.memory_space<vmem>>, vector<16x32xf32>
    %cst = arith.constant dense<0.000000e+00> : vector<32x32xf32>
    %2 = tpu.matmul %0, %1, %cst {dimension_numbers = #tpu.dot_dimension_numbers<[1], [0], [0], [1], [0, 0, 1, 1], [], []>} : vector<32x16xf32>, vector<16x32xf32>, vector<32x32xf32> -> vector<32x32xf32>
    %c0_3 = arith.constant 0 : index
    %c0_4 = arith.constant 0 : index
    %3 = vector.load %arg1[%c0_3, %c0_4] : memref<32x32xf32, #tpu.memory_space<vmem>>, vector<32x32xf32>
    %cst_5 = arith.constant 0.000000e+00 : f32
    %4 = vector.broadcast %cst_5 : f32 to vector<32x32xf32>
    %5 = arith.cmpf ogt, %3, %4 : vector<32x32xf32>
    %c0_6 = arith.constant 0 : index
    %c0_7 = arith.constant 0 : index
    %6 = vector.load %arg5[%c0_6, %c0_7] : memref<32x1xf32, #tpu.memory_space<vmem>>, vector<32x1xf32>
    %cst_8 = arith.constant dense<0.000000e+00> : vector<32x1xf32>
    %7 = tpu.matmul %2, %6, %cst_8 {dimension_numbers = #tpu.dot_dimension_numbers<[1], [0], [0], [1], [0, 0, 1, 1], [], []>} : vector<32x32xf32>, vector<32x1xf32>, vector<32x1xf32> -> vector<32x1xf32>
    %c0_9 = arith.constant 0 : index
    %c0_10 = arith.constant 0 : index
    %8 = vector.load %arg4[%c0_9, %c0_10] : memref<1x32xf32, #tpu.memory_space<vmem>>, vector<1x32xf32>
    %cst_11 = arith.constant dense<0.000000e+00> : vector<1x32xf32>
    %9 = tpu.matmul %8, %2, %cst_11 {dimension_numbers = #tpu.dot_dimension_numbers<[1], [1], [0], [0], [0, 0, 1, 0], [], []>} : vector<1x32xf32>, vector<32x32xf32>, vector<1x32xf32> -> vector<1x32xf32>
    %10 = vector.broadcast %7 : vector<32x1xf32> to vector<32x32xf32>
    %11 = vector.broadcast %9 : vector<1x32xf32> to vector<32x32xf32>
    %12 = arith.addf %10, %11 : vector<32x32xf32>
    %cst_12 = arith.constant 0.000000e+00 : f32
    %13 = vector.broadcast %cst_12 : f32 to vector<32x32xf32>
    %14 = arith.cmpf ogt, %12, %13 : vector<32x32xf32>
    %cst_13 = arith.constant 2.000000e-01 : f32
    %15 = vector.broadcast %cst_13 : f32 to vector<32x32xf32>
    %16 = arith.mulf %15, %12 : vector<32x32xf32>
    %17 = arith.select %14, %12, %16 : vector<32x32xi1>, vector<32x32xf32>
    %cst_14 = arith.constant -1.000000e+30 : f32
    %18 = vector.broadcast %cst_14 : f32 to vector<32x32xf32>
    %19 = arith.select %5, %17, %18 : vector<32x32xi1>, vector<32x32xf32>
    %cst_15 = arith.constant dense<0xFF800000> : vector<32xf32>
    %20 = vector.multi_reduction <maximumf>, %19, %cst_15 [1] : vector<32x32xf32> to vector<32xf32>
    %21 = vector.shape_cast %20 : vector<32xf32> to vector<32x1xf32>
    %22 = vector.broadcast %21 : vector<32x1xf32> to vector<32x32xf32>
    %23 = arith.subf %19, %22 : vector<32x32xf32>
    %24 = math.exp %23 : vector<32x32xf32>
    %cst_16 = arith.constant 0.000000e+00 : f32
    %25 = vector.broadcast %cst_16 : f32 to vector<32x32xf32>
    %26 = arith.select %5, %24, %25 : vector<32x32xi1>, vector<32x32xf32>
    %cst_17 = arith.constant dense<0.000000e+00> : vector<32xf32>
    %27 = vector.multi_reduction <add>, %26, %cst_17 [1] : vector<32x32xf32> to vector<32xf32>
    %28 = vector.shape_cast %27 : vector<32xf32> to vector<32x1xf32>
    %cst_18 = arith.constant 9.99999968E-21 : f32
    %29 = vector.broadcast %cst_18 : f32 to vector<32x1xf32>
    %30 = arith.maximumf %28, %29 : vector<32x1xf32>
    %31 = vector.broadcast %30 : vector<32x1xf32> to vector<32x32xf32>
    %32 = arith.divf %26, %31 : vector<32x32xf32>
    %cst_19 = arith.constant dense<0.000000e+00> : vector<32x32xf32>
    %33 = tpu.matmul %32, %2, %cst_19 {dimension_numbers = #tpu.dot_dimension_numbers<[1], [0], [0], [1], [0, 0, 1, 1], [], []>} : vector<32x32xf32>, vector<32x32xf32>, vector<32x32xf32> -> vector<32x32xf32>
    %cst_20 = arith.constant 0.000000e+00 : f32
    %34 = vector.broadcast %cst_20 : f32 to vector<32x32xf32>
    %35 = arith.cmpf ogt, %33, %34 : vector<32x32xf32>
    %cst_21 = arith.constant 0.000000e+00 : f32
    %36 = vector.broadcast %cst_21 : f32 to vector<32x32xf32>
    %37 = arith.minimumf %33, %36 : vector<32x32xf32>
    %38 = math.exp %37 : vector<32x32xf32>
    %cst_22 = arith.constant 1.000000e+00 : f32
    %39 = vector.broadcast %cst_22 : f32 to vector<32x32xf32>
    %40 = arith.subf %38, %39 : vector<32x32xf32>
    %41 = arith.select %35, %33, %40 : vector<32x32xi1>, vector<32x32xf32>
    %c0_23 = arith.constant 0 : index
    %c0_24 = arith.constant 0 : index
    %42 = vector.load %arg6[%c0_23, %c0_24] : memref<32x32xf32, #tpu.memory_space<vmem>>, vector<32x32xf32>
    tpu.vector_store %arg6[%c0_23, %c0_24], %41 {strides = array<i32>} : memref<32x32xf32, #tpu.memory_space<vmem>>, vector<32x32xf32>,
    return
  }
  func.func @transform_0(%arg0: i32) -> (i32, i32) {
    %c0_i32 = arith.constant 0 : i32
    %c0_i32_0 = arith.constant 0 : i32
    %c0_i32_1 = arith.constant 0 : i32
    return %c0_i32, %c0_i32_0 : i32, i32
  }
  func.func @transform_1(%arg0: i32) -> (i32, i32) {
    %c0_i32 = arith.constant 0 : i32
    %c0_i32_0 = arith.constant 0 : i32
    %c0_i32_1 = arith.constant 0 : i32
    return %c0_i32, %c0_i32_0 : i32, i32
  }
  func.func @transform_2(%arg0: i32) -> (i32, i32) {
    %c0_i32 = arith.constant 0 : i32
    %c0_i32_0 = arith.constant 0 : i32
    %c0_i32_1 = arith.constant 0 : i32
    return %c0_i32, %c0_i32_0 : i32, i32
  }
  func.func @transform_3(%arg0: i32) -> (i32, i32) {
    %c0_i32 = arith.constant 0 : i32
    %c0_i32_0 = arith.constant 0 : i32
    %c0_i32_1 = arith.constant 0 : i32
    return %c0_i32, %c0_i32_0 : i32, i32
  }
  func.func @transform_4(%arg0: i32) -> (i32, i32) {
    %c0_i32 = arith.constant 0 : i32
    %c0_i32_0 = arith.constant 0 : i32
    %c0_i32_1 = arith.constant 0 : i32
    return %c0_i32, %c0_i32_0 : i32, i32
  }
  func.func @transform_5(%arg0: i32) -> (i32, i32) {
    %c0_i32 = arith.constant 0 : i32
    %c0_i32_0 = arith.constant 0 : i32
    %c0_i32_1 = arith.constant 0 : i32
    return %c0_i32, %c0_i32_0 : i32, i32
  }
}

module attributes {stable_mosaic.version = 11 : i64} {
  func.func @_gat_layer_kernel(%arg0: i32, %arg1: memref<32x32xf32, #tpu.memory_space<vmem>>, %arg2: memref<32x32xf32, #tpu.memory_space<vmem>>, %arg3: memref<32x32xf32, #tpu.memory_space<vmem>>, %arg4: memref<1x32xf32, #tpu.memory_space<vmem>>, %arg5: memref<32x1xf32, #tpu.memory_space<vmem>>, %arg6: memref<32x32xf32, #tpu.memory_space<vmem>>) attributes {dimension_semantics = [#tpu.dimension_semantics<arbitrary>], iteration_bounds = array<i64: 1>, scalar_prefetch = 0 : i64, scratch_operands = 0 : i64, tpu.core_type = #tpu.core_type<tc>, window_params = [{pipeline_mode = #tpu.pipeline_mode<synchronous>, transform_indices = @transform_0, window_bounds = array<i64: 32, 32>}, {pipeline_mode = #tpu.pipeline_mode<synchronous>, transform_indices = @transform_1, window_bounds = array<i64: 32, 32>}, {pipeline_mode = #tpu.pipeline_mode<synchronous>, transform_indices = @transform_2, window_bounds = array<i64: 32, 32>}, {pipeline_mode = #tpu.pipeline_mode<synchronous>, transform_indices = @transform_3, window_bounds = array<i64: 1, 32>}, {pipeline_mode = #tpu.pipeline_mode<synchronous>, transform_indices = @transform_4, window_bounds = array<i64: 32, 1>}, {pipeline_mode = #tpu.pipeline_mode<synchronous>, transform_indices = @transform_5, window_bounds = array<i64: 32, 32>}]} {
    %c0 = arith.constant 0 : index
    %c0_0 = arith.constant 0 : index
    %0 = vector.load %arg2[%c0, %c0_0] : memref<32x32xf32, #tpu.memory_space<vmem>>, vector<32x32xf32>
    %c0_1 = arith.constant 0 : index
    %c0_2 = arith.constant 0 : index
    %1 = vector.load %arg3[%c0_1, %c0_2] : memref<32x32xf32, #tpu.memory_space<vmem>>, vector<32x32xf32>
    %cst = arith.constant dense<0.000000e+00> : vector<32x32xf32>
    %2 = tpu.matmul %0, %1, %cst {dimension_numbers = #tpu.dot_dimension_numbers<[1], [0], [0], [1], [0, 0, 1, 1], [], []>} : vector<32x32xf32>, vector<32x32xf32>, vector<32x32xf32> -> vector<32x32xf32>
    %c0_3 = arith.constant 0 : index
    %c0_4 = arith.constant 0 : index
    %3 = vector.load %arg1[%c0_3, %c0_4] : memref<32x32xf32, #tpu.memory_space<vmem>>, vector<32x32xf32>
    %cst_5 = arith.constant 0.000000e+00 : f32
    %4 = vector.broadcast %cst_5 : f32 to vector<32x32xf32>
    %5 = arith.cmpf ogt, %3, %4 : vector<32x32xf32>
    %c0_6 = arith.constant 0 : index
    %c0_7 = arith.constant 0 : index
    %6 = vector.load %arg5[%c0_6, %c0_7] : memref<32x1xf32, #tpu.memory_space<vmem>>, vector<32x1xf32>
    %cst_8 = arith.constant dense<0.000000e+00> : vector<32x1xf32>
    %7 = tpu.matmul %2, %6, %cst_8 {dimension_numbers = #tpu.dot_dimension_numbers<[1], [0], [0], [1], [0, 0, 1, 1], [], []>} : vector<32x32xf32>, vector<32x1xf32>, vector<32x1xf32> -> vector<32x1xf32>
    %c0_9 = arith.constant 0 : index
    %c0_10 = arith.constant 0 : index
    %8 = vector.load %arg4[%c0_9, %c0_10] : memref<1x32xf32, #tpu.memory_space<vmem>>, vector<1x32xf32>
    %cst_11 = arith.constant dense<0.000000e+00> : vector<1x32xf32>
    %9 = tpu.matmul %8, %2, %cst_11 {dimension_numbers = #tpu.dot_dimension_numbers<[1], [1], [0], [0], [0, 0, 1, 0], [], []>} : vector<1x32xf32>, vector<32x32xf32>, vector<1x32xf32> -> vector<1x32xf32>
    %10 = vector.broadcast %7 : vector<32x1xf32> to vector<32x32xf32>
    %11 = vector.broadcast %9 : vector<1x32xf32> to vector<32x32xf32>
    %12 = arith.addf %10, %11 : vector<32x32xf32>
    %cst_12 = arith.constant 0.000000e+00 : f32
    %13 = vector.broadcast %cst_12 : f32 to vector<32x32xf32>
    %14 = arith.cmpf ogt, %12, %13 : vector<32x32xf32>
    %cst_13 = arith.constant 2.000000e-01 : f32
    %15 = vector.broadcast %cst_13 : f32 to vector<32x32xf32>
    %16 = arith.mulf %15, %12 : vector<32x32xf32>
    %17 = arith.select %14, %12, %16 : vector<32x32xi1>, vector<32x32xf32>
    %cst_14 = arith.constant -1.000000e+30 : f32
    %18 = vector.broadcast %cst_14 : f32 to vector<32x32xf32>
    %19 = arith.select %5, %17, %18 : vector<32x32xi1>, vector<32x32xf32>
    %cst_15 = arith.constant dense<0xFF800000> : vector<32xf32>
    %20 = vector.multi_reduction <maximumf>, %19, %cst_15 [1] : vector<32x32xf32> to vector<32xf32>
    %21 = vector.shape_cast %20 : vector<32xf32> to vector<32x1xf32>
    %22 = vector.broadcast %21 : vector<32x1xf32> to vector<32x32xf32>
    %23 = arith.subf %19, %22 : vector<32x32xf32>
    %24 = math.exp %23 : vector<32x32xf32>
    %cst_16 = arith.constant 0.000000e+00 : f32
    %25 = vector.broadcast %cst_16 : f32 to vector<32x32xf32>
    %26 = arith.select %5, %24, %25 : vector<32x32xi1>, vector<32x32xf32>
    %cst_17 = arith.constant dense<0.000000e+00> : vector<32xf32>
    %27 = vector.multi_reduction <add>, %26, %cst_17 [1] : vector<32x32xf32> to vector<32xf32>
    %28 = vector.shape_cast %27 : vector<32xf32> to vector<32x1xf32>
    %cst_18 = arith.constant 9.99999968E-21 : f32
    %29 = vector.broadcast %cst_18 : f32 to vector<32x1xf32>
    %30 = arith.maximumf %28, %29 : vector<32x1xf32>
    %31 = vector.broadcast %30 : vector<32x1xf32> to vector<32x32xf32>
    %32 = arith.divf %26, %31 : vector<32x32xf32>
    %cst_19 = arith.constant dense<0.000000e+00> : vector<32x32xf32>
    %33 = tpu.matmul %32, %2, %cst_19 {dimension_numbers = #tpu.dot_dimension_numbers<[1], [0], [0], [1], [0, 0, 1, 1], [], []>} : vector<32x32xf32>, vector<32x32xf32>, vector<32x32xf32> -> vector<32x32xf32>
    %cst_20 = arith.constant 0.000000e+00 : f32
    %34 = vector.broadcast %cst_20 : f32 to vector<32x32xf32>
    %35 = arith.cmpf ogt, %33, %34 : vector<32x32xf32>
    %cst_21 = arith.constant 0.000000e+00 : f32
    %36 = vector.broadcast %cst_21 : f32 to vector<32x32xf32>
    %37 = arith.minimumf %33, %36 : vector<32x32xf32>
    %38 = math.exp %37 : vector<32x32xf32>
    %cst_22 = arith.constant 1.000000e+00 : f32
    %39 = vector.broadcast %cst_22 : f32 to vector<32x32xf32>
    %40 = arith.subf %38, %39 : vector<32x32xf32>
    %41 = arith.select %35, %33, %40 : vector<32x32xi1>, vector<32x32xf32>
    %c0_23 = arith.constant 0 : index
    %c0_24 = arith.constant 0 : index
    %42 = vector.load %arg6[%c0_23, %c0_24] : memref<32x32xf32, #tpu.memory_space<vmem>>, vector<32x32xf32>
    tpu.vector_store %arg6[%c0_23, %c0_24], %41 {strides = array<i32>} : memref<32x32xf32, #tpu.memory_space<vmem>>, vector<32x32xf32>,
    return
  }
  func.func @transform_0(%arg0: i32) -> (i32, i32) {
    %c0_i32 = arith.constant 0 : i32
    %c0_i32_0 = arith.constant 0 : i32
    %c0_i32_1 = arith.constant 0 : i32
    return %c0_i32, %c0_i32_0 : i32, i32
  }
  func.func @transform_1(%arg0: i32) -> (i32, i32) {
    %c0_i32 = arith.constant 0 : i32
    %c0_i32_0 = arith.constant 0 : i32
    %c0_i32_1 = arith.constant 0 : i32
    return %c0_i32, %c0_i32_0 : i32, i32
  }
  func.func @transform_2(%arg0: i32) -> (i32, i32) {
    %c0_i32 = arith.constant 0 : i32
    %c0_i32_0 = arith.constant 0 : i32
    %c0_i32_1 = arith.constant 0 : i32
    return %c0_i32, %c0_i32_0 : i32, i32
  }
  func.func @transform_3(%arg0: i32) -> (i32, i32) {
    %c0_i32 = arith.constant 0 : i32
    %c0_i32_0 = arith.constant 0 : i32
    %c0_i32_1 = arith.constant 0 : i32
    return %c0_i32, %c0_i32_0 : i32, i32
  }
  func.func @transform_4(%arg0: i32) -> (i32, i32) {
    %c0_i32 = arith.constant 0 : i32
    %c0_i32_0 = arith.constant 0 : i32
    %c0_i32_1 = arith.constant 0 : i32
    return %c0_i32, %c0_i32_0 : i32, i32
  }
  func.func @transform_5(%arg0: i32) -> (i32, i32) {
    %c0_i32 = arith.constant 0 : i32
    %c0_i32_0 = arith.constant 0 : i32
    %c0_i32_1 = arith.constant 0 : i32
    return %c0_i32, %c0_i32_0 : i32, i32
  }
}

module attributes {stable_mosaic.version = 11 : i64} {
  func.func @_gat_layer_kernel(%arg0: i32, %arg1: memref<32x32xf32, #tpu.memory_space<vmem>>, %arg2: memref<32x32xf32, #tpu.memory_space<vmem>>, %arg3: memref<32x64xf32, #tpu.memory_space<vmem>>, %arg4: memref<2x64xf32, #tpu.memory_space<vmem>>, %arg5: memref<64x2xf32, #tpu.memory_space<vmem>>, %arg6: memref<32x64xf32, #tpu.memory_space<vmem>>, %arg7: memref<32x32xf32, #tpu.memory_space<vmem>>) attributes {dimension_semantics = [#tpu.dimension_semantics<arbitrary>], iteration_bounds = array<i64: 1>, scalar_prefetch = 0 : i64, scratch_operands = 0 : i64, tpu.core_type = #tpu.core_type<tc>, window_params = [{pipeline_mode = #tpu.pipeline_mode<synchronous>, transform_indices = @transform_0, window_bounds = array<i64: 32, 32>}, {pipeline_mode = #tpu.pipeline_mode<synchronous>, transform_indices = @transform_1, window_bounds = array<i64: 32, 32>}, {pipeline_mode = #tpu.pipeline_mode<synchronous>, transform_indices = @transform_2, window_bounds = array<i64: 32, 64>}, {pipeline_mode = #tpu.pipeline_mode<synchronous>, transform_indices = @transform_3, window_bounds = array<i64: 2, 64>}, {pipeline_mode = #tpu.pipeline_mode<synchronous>, transform_indices = @transform_4, window_bounds = array<i64: 64, 2>}, {pipeline_mode = #tpu.pipeline_mode<synchronous>, transform_indices = @transform_5, window_bounds = array<i64: 32, 64>}, {pipeline_mode = #tpu.pipeline_mode<synchronous>, transform_indices = @transform_6, window_bounds = array<i64: 32, 32>}]} {
    %c0 = arith.constant 0 : index
    %c0_0 = arith.constant 0 : index
    %0 = vector.load %arg2[%c0, %c0_0] : memref<32x32xf32, #tpu.memory_space<vmem>>, vector<32x32xf32>
    %c0_1 = arith.constant 0 : index
    %c0_2 = arith.constant 0 : index
    %1 = vector.load %arg3[%c0_1, %c0_2] : memref<32x64xf32, #tpu.memory_space<vmem>>, vector<32x64xf32>
    %cst = arith.constant dense<0.000000e+00> : vector<32x64xf32>
    %2 = tpu.matmul %0, %1, %cst {dimension_numbers = #tpu.dot_dimension_numbers<[1], [0], [0], [1], [0, 0, 1, 1], [], []>} : vector<32x32xf32>, vector<32x64xf32>, vector<32x64xf32> -> vector<32x64xf32>
    %c0_3 = arith.constant 0 : index
    %c0_4 = arith.constant 0 : index
    %3 = vector.load %arg1[%c0_3, %c0_4] : memref<32x32xf32, #tpu.memory_space<vmem>>, vector<32x32xf32>
    %cst_5 = arith.constant 0.000000e+00 : f32
    %4 = vector.broadcast %cst_5 : f32 to vector<32x32xf32>
    %5 = arith.cmpf ogt, %3, %4 : vector<32x32xf32>
    %c0_6 = arith.constant 0 : index
    %c0_7 = arith.constant 0 : index
    %6 = vector.load %arg5[%c0_6, %c0_7] : memref<64x2xf32, #tpu.memory_space<vmem>>, vector<64x2xf32>
    %cst_8 = arith.constant dense<0.000000e+00> : vector<32x2xf32>
    %7 = tpu.matmul %2, %6, %cst_8 {dimension_numbers = #tpu.dot_dimension_numbers<[1], [0], [0], [1], [0, 0, 1, 1], [], []>} : vector<32x64xf32>, vector<64x2xf32>, vector<32x2xf32> -> vector<32x2xf32>
    %c0_9 = arith.constant 0 : index
    %c0_10 = arith.constant 0 : index
    %8 = vector.load %arg4[%c0_9, %c0_10] : memref<2x64xf32, #tpu.memory_space<vmem>>, vector<2x64xf32>
    %cst_11 = arith.constant dense<0.000000e+00> : vector<2x32xf32>
    %9 = tpu.matmul %8, %2, %cst_11 {dimension_numbers = #tpu.dot_dimension_numbers<[1], [1], [0], [0], [0, 0, 1, 0], [], []>} : vector<2x64xf32>, vector<32x64xf32>, vector<2x32xf32> -> vector<2x32xf32>
    %10 = vector.extract_strided_slice %7 {offsets = [0, 0], sizes = [32, 1], strides = [1, 1]} : vector<32x2xf32> to vector<32x1xf32>
    %11 = vector.extract_strided_slice %9 {offsets = [0, 0], sizes = [1, 32], strides = [1, 1]} : vector<2x32xf32> to vector<1x32xf32>
    %12 = vector.broadcast %10 : vector<32x1xf32> to vector<32x32xf32>
    %13 = vector.broadcast %11 : vector<1x32xf32> to vector<32x32xf32>
    %14 = arith.addf %12, %13 : vector<32x32xf32>
    %cst_12 = arith.constant 0.000000e+00 : f32
    %15 = vector.broadcast %cst_12 : f32 to vector<32x32xf32>
    %16 = arith.cmpf ogt, %14, %15 : vector<32x32xf32>
    %cst_13 = arith.constant 2.000000e-01 : f32
    %17 = vector.broadcast %cst_13 : f32 to vector<32x32xf32>
    %18 = arith.mulf %17, %14 : vector<32x32xf32>
    %19 = arith.select %16, %14, %18 : vector<32x32xi1>, vector<32x32xf32>
    %cst_14 = arith.constant -1.000000e+30 : f32
    %20 = vector.broadcast %cst_14 : f32 to vector<32x32xf32>
    %21 = arith.select %5, %19, %20 : vector<32x32xi1>, vector<32x32xf32>
    %cst_15 = arith.constant dense<0xFF800000> : vector<32xf32>
    %22 = vector.multi_reduction <maximumf>, %21, %cst_15 [1] : vector<32x32xf32> to vector<32xf32>
    %23 = vector.shape_cast %22 : vector<32xf32> to vector<32x1xf32>
    %24 = vector.broadcast %23 : vector<32x1xf32> to vector<32x32xf32>
    %25 = arith.subf %21, %24 : vector<32x32xf32>
    %26 = math.exp %25 : vector<32x32xf32>
    %cst_16 = arith.constant 0.000000e+00 : f32
    %27 = vector.broadcast %cst_16 : f32 to vector<32x32xf32>
    %28 = arith.select %5, %26, %27 : vector<32x32xi1>, vector<32x32xf32>
    %cst_17 = arith.constant dense<0.000000e+00> : vector<32xf32>
    %29 = vector.multi_reduction <add>, %28, %cst_17 [1] : vector<32x32xf32> to vector<32xf32>
    %30 = vector.shape_cast %29 : vector<32xf32> to vector<32x1xf32>
    %cst_18 = arith.constant 9.99999968E-21 : f32
    %31 = vector.broadcast %cst_18 : f32 to vector<32x1xf32>
    %32 = arith.maximumf %30, %31 : vector<32x1xf32>
    %33 = vector.broadcast %32 : vector<32x1xf32> to vector<32x32xf32>
    %34 = arith.divf %28, %33 : vector<32x32xf32>
    %35 = vector.extract_strided_slice %2 {offsets = [0, 0], sizes = [32, 32], strides = [1, 1]} : vector<32x64xf32> to vector<32x32xf32>
    %cst_19 = arith.constant dense<0.000000e+00> : vector<32x32xf32>
    %36 = tpu.matmul %34, %35, %cst_19 {dimension_numbers = #tpu.dot_dimension_numbers<[1], [0], [0], [1], [0, 0, 1, 1], [], []>} : vector<32x32xf32>, vector<32x32xf32>, vector<32x32xf32> -> vector<32x32xf32>
    %c0_20 = arith.constant 0 : index
    %c0_21 = arith.constant 0 : index
    %37 = vector.load %arg6[%c0_20, %c0_21] : memref<32x64xf32, #tpu.memory_space<vmem>>, vector<32x32xf32>
    %cst_22 = arith.constant dense<0.000000e+00> : vector<32x32xf32>
    %38 = tpu.matmul %0, %37, %cst_22 {dimension_numbers = #tpu.dot_dimension_numbers<[1], [0], [0], [1], [0, 0, 1, 1], [], []>} : vector<32x32xf32>, vector<32x32xf32>, vector<32x32xf32> -> vector<32x32xf32>
    %39 = arith.addf %36, %38 : vector<32x32xf32>
    %cst_23 = arith.constant 0.000000e+00 : f32
    %40 = vector.broadcast %cst_23 : f32 to vector<32x32xf32>
    %41 = arith.cmpf ogt, %39, %40 : vector<32x32xf32>
    %cst_24 = arith.constant 0.000000e+00 : f32
    %42 = vector.broadcast %cst_24 : f32 to vector<32x32xf32>
    %43 = arith.minimumf %39, %42 : vector<32x32xf32>
    %44 = math.exp %43 : vector<32x32xf32>
    %cst_25 = arith.constant 1.000000e+00 : f32
    %45 = vector.broadcast %cst_25 : f32 to vector<32x32xf32>
    %46 = arith.subf %44, %45 : vector<32x32xf32>
    %47 = arith.select %41, %39, %46 : vector<32x32xi1>, vector<32x32xf32>
    %48 = vector.extract_strided_slice %7 {offsets = [0, 1], sizes = [32, 1], strides = [1, 1]} : vector<32x2xf32> to vector<32x1xf32>
    %49 = vector.extract_strided_slice %9 {offsets = [1, 0], sizes = [1, 32], strides = [1, 1]} : vector<2x32xf32> to vector<1x32xf32>
    %50 = vector.broadcast %48 : vector<32x1xf32> to vector<32x32xf32>
    %51 = vector.broadcast %49 : vector<1x32xf32> to vector<32x32xf32>
    %52 = arith.addf %50, %51 : vector<32x32xf32>
    %cst_26 = arith.constant 0.000000e+00 : f32
    %53 = vector.broadcast %cst_26 : f32 to vector<32x32xf32>
    %54 = arith.cmpf ogt, %52, %53 : vector<32x32xf32>
    %cst_27 = arith.constant 2.000000e-01 : f32
    %55 = vector.broadcast %cst_27 : f32 to vector<32x32xf32>
    %56 = arith.mulf %55, %52 : vector<32x32xf32>
    %57 = arith.select %54, %52, %56 : vector<32x32xi1>, vector<32x32xf32>
    %cst_28 = arith.constant -1.000000e+30 : f32
    %58 = vector.broadcast %cst_28 : f32 to vector<32x32xf32>
    %59 = arith.select %5, %57, %58 : vector<32x32xi1>, vector<32x32xf32>
    %cst_29 = arith.constant dense<0xFF800000> : vector<32xf32>
    %60 = vector.multi_reduction <maximumf>, %59, %cst_29 [1] : vector<32x32xf32> to vector<32xf32>
    %61 = vector.shape_cast %60 : vector<32xf32> to vector<32x1xf32>
    %62 = vector.broadcast %61 : vector<32x1xf32> to vector<32x32xf32>
    %63 = arith.subf %59, %62 : vector<32x32xf32>
    %64 = math.exp %63 : vector<32x32xf32>
    %cst_30 = arith.constant 0.000000e+00 : f32
    %65 = vector.broadcast %cst_30 : f32 to vector<32x32xf32>
    %66 = arith.select %5, %64, %65 : vector<32x32xi1>, vector<32x32xf32>
    %cst_31 = arith.constant dense<0.000000e+00> : vector<32xf32>
    %67 = vector.multi_reduction <add>, %66, %cst_31 [1] : vector<32x32xf32> to vector<32xf32>
    %68 = vector.shape_cast %67 : vector<32xf32> to vector<32x1xf32>
    %cst_32 = arith.constant 9.99999968E-21 : f32
    %69 = vector.broadcast %cst_32 : f32 to vector<32x1xf32>
    %70 = arith.maximumf %68, %69 : vector<32x1xf32>
    %71 = vector.broadcast %70 : vector<32x1xf32> to vector<32x32xf32>
    %72 = arith.divf %66, %71 : vector<32x32xf32>
    %73 = vector.extract_strided_slice %2 {offsets = [0, 32], sizes = [32, 32], strides = [1, 1]} : vector<32x64xf32> to vector<32x32xf32>
    %cst_33 = arith.constant dense<0.000000e+00> : vector<32x32xf32>
    %74 = tpu.matmul %72, %73, %cst_33 {dimension_numbers = #tpu.dot_dimension_numbers<[1], [0], [0], [1], [0, 0, 1, 1], [], []>} : vector<32x32xf32>, vector<32x32xf32>, vector<32x32xf32> -> vector<32x32xf32>
    %c0_34 = arith.constant 0 : index
    %c32 = arith.constant 32 : index
    %75 = vector.load %arg6[%c0_34, %c32] : memref<32x64xf32, #tpu.memory_space<vmem>>, vector<32x32xf32>
    %cst_35 = arith.constant dense<0.000000e+00> : vector<32x32xf32>
    %76 = tpu.matmul %0, %75, %cst_35 {dimension_numbers = #tpu.dot_dimension_numbers<[1], [0], [0], [1], [0, 0, 1, 1], [], []>} : vector<32x32xf32>, vector<32x32xf32>, vector<32x32xf32> -> vector<32x32xf32>
    %77 = arith.addf %74, %76 : vector<32x32xf32>
    %cst_36 = arith.constant 0.000000e+00 : f32
    %78 = vector.broadcast %cst_36 : f32 to vector<32x32xf32>
    %79 = arith.cmpf ogt, %77, %78 : vector<32x32xf32>
    %cst_37 = arith.constant 0.000000e+00 : f32
    %80 = vector.broadcast %cst_37 : f32 to vector<32x32xf32>
    %81 = arith.minimumf %77, %80 : vector<32x32xf32>
    %82 = math.exp %81 : vector<32x32xf32>
    %cst_38 = arith.constant 1.000000e+00 : f32
    %83 = vector.broadcast %cst_38 : f32 to vector<32x32xf32>
    %84 = arith.subf %82, %83 : vector<32x32xf32>
    %85 = arith.select %79, %77, %84 : vector<32x32xi1>, vector<32x32xf32>
    %86 = arith.addf %47, %85 : vector<32x32xf32>
    %cst_39 = arith.constant 5.000000e-01 : f32
    %87 = vector.broadcast %cst_39 : f32 to vector<32x32xf32>
    %88 = arith.mulf %86, %87 : vector<32x32xf32>
    %c0_40 = arith.constant 0 : index
    %c0_41 = arith.constant 0 : index
    %89 = vector.load %arg7[%c0_40, %c0_41] : memref<32x32xf32, #tpu.memory_space<vmem>>, vector<32x32xf32>
    tpu.vector_store %arg7[%c0_40, %c0_41], %88 {strides = array<i32>} : memref<32x32xf32, #tpu.memory_space<vmem>>, vector<32x32xf32>,
    return
  }
  func.func @transform_0(%arg0: i32) -> (i32, i32) {
    %c0_i32 = arith.constant 0 : i32
    %c0_i32_0 = arith.constant 0 : i32
    %c0_i32_1 = arith.constant 0 : i32
    return %c0_i32, %c0_i32_0 : i32, i32
  }
  func.func @transform_1(%arg0: i32) -> (i32, i32) {
    %c0_i32 = arith.constant 0 : i32
    %c0_i32_0 = arith.constant 0 : i32
    %c0_i32_1 = arith.constant 0 : i32
    return %c0_i32, %c0_i32_0 : i32, i32
  }
  func.func @transform_2(%arg0: i32) -> (i32, i32) {
    %c0_i32 = arith.constant 0 : i32
    %c0_i32_0 = arith.constant 0 : i32
    %c0_i32_1 = arith.constant 0 : i32
    return %c0_i32, %c0_i32_0 : i32, i32
  }
  func.func @transform_3(%arg0: i32) -> (i32, i32) {
    %c0_i32 = arith.constant 0 : i32
    %c0_i32_0 = arith.constant 0 : i32
    %c0_i32_1 = arith.constant 0 : i32
    return %c0_i32, %c0_i32_0 : i32, i32
  }
  func.func @transform_4(%arg0: i32) -> (i32, i32) {
    %c0_i32 = arith.constant 0 : i32
    %c0_i32_0 = arith.constant 0 : i32
    %c0_i32_1 = arith.constant 0 : i32
    return %c0_i32, %c0_i32_0 : i32, i32
  }
  func.func @transform_5(%arg0: i32) -> (i32, i32) {
    %c0_i32 = arith.constant 0 : i32
    %c0_i32_0 = arith.constant 0 : i32
    %c0_i32_1 = arith.constant 0 : i32
    return %c0_i32, %c0_i32_0 : i32, i32
  }
  func.func @transform_6(%arg0: i32) -> (i32, i32) {
    %c0_i32 = arith.constant 0 : i32
    %c0_i32_0 = arith.constant 0 : i32
    %c0_i32_1 = arith.constant 0 : i32
    return %c0_i32, %c0_i32_0 : i32, i32
  }
}

module attributes {stable_mosaic.version = 11 : i64} {
  func.func @_mlp_head_kernel(%arg0: i32, %arg1: memref<32x96xf32, #tpu.memory_space<vmem>>, %arg2: memref<96x8xf32, #tpu.memory_space<vmem>>, %arg3: memref<1x8xf32, #tpu.memory_space<vmem>>, %arg4: memref<8x1xf32, #tpu.memory_space<vmem>>, %arg5: memref<1x1xf32, #tpu.memory_space<vmem>>, %arg6: memref<32x1xf32, #tpu.memory_space<vmem>>) attributes {dimension_semantics = [#tpu.dimension_semantics<arbitrary>], iteration_bounds = array<i64: 1>, scalar_prefetch = 0 : i64, scratch_operands = 0 : i64, tpu.core_type = #tpu.core_type<tc>, window_params = [{pipeline_mode = #tpu.pipeline_mode<synchronous>, transform_indices = @transform_0, window_bounds = array<i64: 32, 96>}, {pipeline_mode = #tpu.pipeline_mode<synchronous>, transform_indices = @transform_1, window_bounds = array<i64: 96, 8>}, {pipeline_mode = #tpu.pipeline_mode<synchronous>, transform_indices = @transform_2, window_bounds = array<i64: 1, 8>}, {pipeline_mode = #tpu.pipeline_mode<synchronous>, transform_indices = @transform_3, window_bounds = array<i64: 8, 1>}, {pipeline_mode = #tpu.pipeline_mode<synchronous>, transform_indices = @transform_4, window_bounds = array<i64: 1, 1>}, {pipeline_mode = #tpu.pipeline_mode<synchronous>, transform_indices = @transform_5, window_bounds = array<i64: 32, 1>}]} {
    %c0 = arith.constant 0 : index
    %c0_0 = arith.constant 0 : index
    %0 = vector.load %arg1[%c0, %c0_0] : memref<32x96xf32, #tpu.memory_space<vmem>>, vector<32x96xf32>
    %c0_1 = arith.constant 0 : index
    %c0_2 = arith.constant 0 : index
    %1 = vector.load %arg2[%c0_1, %c0_2] : memref<96x8xf32, #tpu.memory_space<vmem>>, vector<96x8xf32>
    %cst = arith.constant dense<0.000000e+00> : vector<32x8xf32>
    %2 = tpu.matmul %0, %1, %cst {dimension_numbers = #tpu.dot_dimension_numbers<[1], [0], [0], [1], [0, 0, 1, 1], [], []>} : vector<32x96xf32>, vector<96x8xf32>, vector<32x8xf32> -> vector<32x8xf32>
    %c0_3 = arith.constant 0 : index
    %c0_4 = arith.constant 0 : index
    %3 = vector.load %arg3[%c0_3, %c0_4] : memref<1x8xf32, #tpu.memory_space<vmem>>, vector<1x8xf32>
    %4 = vector.broadcast %3 : vector<1x8xf32> to vector<32x8xf32>
    %5 = arith.addf %2, %4 : vector<32x8xf32>
    %cst_5 = arith.constant 0.000000e+00 : f32
    %6 = vector.broadcast %cst_5 : f32 to vector<32x8xf32>
    %7 = arith.maximumf %5, %6 : vector<32x8xf32>
    %c0_6 = arith.constant 0 : index
    %c0_7 = arith.constant 0 : index
    %8 = vector.load %arg4[%c0_6, %c0_7] : memref<8x1xf32, #tpu.memory_space<vmem>>, vector<8x1xf32>
    %cst_8 = arith.constant dense<0.000000e+00> : vector<32x1xf32>
    %9 = tpu.matmul %7, %8, %cst_8 {dimension_numbers = #tpu.dot_dimension_numbers<[1], [0], [0], [1], [0, 0, 1, 1], [], []>} : vector<32x8xf32>, vector<8x1xf32>, vector<32x1xf32> -> vector<32x1xf32>
    %c0_9 = arith.constant 0 : index
    %c0_10 = arith.constant 0 : index
    %10 = vector.load %arg5[%c0_9, %c0_10] : memref<1x1xf32, #tpu.memory_space<vmem>>, vector<1x1xf32>
    %11 = vector.broadcast %10 : vector<1x1xf32> to vector<32x1xf32>
    %12 = arith.addf %9, %11 : vector<32x1xf32>
    %cst_11 = arith.constant 0.000000e+00 : f32
    %13 = vector.broadcast %cst_11 : f32 to vector<32x1xf32>
    %14 = arith.maximumf %12, %13 : vector<32x1xf32>
    %c0_12 = arith.constant 0 : index
    %c0_13 = arith.constant 0 : index
    %15 = vector.load %arg6[%c0_12, %c0_13] : memref<32x1xf32, #tpu.memory_space<vmem>>, vector<32x1xf32>
    tpu.vector_store %arg6[%c0_12, %c0_13], %14 {strides = array<i32>} : memref<32x1xf32, #tpu.memory_space<vmem>>, vector<32x1xf32>,
    return
  }
  func.func @transform_0(%arg0: i32) -> (i32, i32) {
    %c0_i32 = arith.constant 0 : i32
    %c0_i32_0 = arith.constant 0 : i32
    %c0_i32_1 = arith.constant 0 : i32
    return %c0_i32, %c0_i32_0 : i32, i32
  }
  func.func @transform_1(%arg0: i32) -> (i32, i32) {
    %c0_i32 = arith.constant 0 : i32
    %c0_i32_0 = arith.constant 0 : i32
    %c0_i32_1 = arith.constant 0 : i32
    return %c0_i32, %c0_i32_0 : i32, i32
  }
  func.func @transform_2(%arg0: i32) -> (i32, i32) {
    %c0_i32 = arith.constant 0 : i32
    %c0_i32_0 = arith.constant 0 : i32
    %c0_i32_1 = arith.constant 0 : i32
    return %c0_i32, %c0_i32_0 : i32, i32
  }
  func.func @transform_3(%arg0: i32) -> (i32, i32) {
    %c0_i32 = arith.constant 0 : i32
    %c0_i32_0 = arith.constant 0 : i32
    %c0_i32_1 = arith.constant 0 : i32
    return %c0_i32, %c0_i32_0 : i32, i32
  }
  func.func @transform_4(%arg0: i32) -> (i32, i32) {
    %c0_i32 = arith.constant 0 : i32
    %c0_i32_0 = arith.constant 0 : i32
    %c0_i32_1 = arith.constant 0 : i32
    return %c0_i32, %c0_i32_0 : i32, i32
  }
  func.func @transform_5(%arg0: i32) -> (i32, i32) {
    %c0_i32 = arith.constant 0 : i32
    %c0_i32_0 = arith.constant 0 : i32
    %c0_i32_1 = arith.constant 0 : i32
    return %c0_i32, %c0_i32_0 : i32, i32
  }
}

</mosaic_0001>

<bundles_post_ra>
// kernel: gat2_forward.5
= control target key start
LH: loop header
LB: loop body
LE: loop exit
PB: predicated region body
PF: predicated region fallthrough
CT: control target
= control target key end

     0   :  { %vm28_vm0 = vcmask 261120   ;;  %v699_v16 = vmov 0.0|0.0   ;;  %vm700_vm1 = vmmov 0   ;;  %v701_v17 = vmov 0.0   ;;  %s831_s2 = inlined_call_operand.vmem [shape: f32[32,32], index: 2, kind: input, shape index: {}]   ;;  %s832_s1 = inlined_call_operand.vmem [shape: f32[32,32], index: 1, kind: input, shape index: {}]   ;;  %s833_s4 = inlined_call_operand.vmem [shape: f32[32,1], index: 4, kind: input, shape index: {}]   ;;  %s834_s3 = inlined_call_operand.vmem [shape: f32[1,32], index: 3, kind: input, shape index: {}]   ;;  %s835_s0 = inlined_call_operand.vmem [shape: f32[32,32], index: 0, kind: input, shape index: {}]   ;;  %s836_s5 = inlined_call_operand.vmem [shape: f32[32,32], index: 5, kind: output, shape index: {}]  }
   0x1   :  { %v24_v0 = vld [vmem:[%s831_s2] sm:$0xff]  ;;  %v25_v1 = vld [vmem:[%s831_s2 + $0x8] sm:$0xff]  ;;  %v26_v2 = vld [vmem:[%s831_s2 + $0x10] sm:$0xff]  ;;  %v702_v25 = vmov 0   ;;  %v329_v32 = vlaneseq }
   0x2   :  { %v637_v3 = vpack.c.bf16 %v25_v1, %v24_v0  ;;  %v27_v4 = vld [vmem:[%s831_s2 + $0x18] sm:$0xff]  ;;  %v20_v5 = vld [vmem:[%s832_s1] sm:$0xff]  ;;  %v135_v8 = vld [vmem:[%s833_s4 + $0x8] sm:$0xff]  ;;  %673 = vset.pattern.permute.xlu0 %v702_v25  ;;  %674 = vset.pattern.permute.xlu1 %v702_v25 }
   0x3   :  { %v641_v6 = vpack.c.bf16 %v27_v4, %v26_v2  ;;  %592 = vmatprep.mubr.msk.f32.mxu0 %vm28_vm0, %v20_v5  ;;  %v134_v7 = vld [vmem:[%s833_s4] sm:$0xff]  ;;  %v136_v9 = vld [vmem:[%s833_s4 + $0x10] sm:$0xff]  ;;  %v137_v10 = vld [vmem:[%s833_s4 + $0x18] sm:$0xff]  ;;  %v330_v33 = vshrl.u32 %v329_v32, 7 }
   0x4   :  { %638 = vmatprep.subr.bf16.mxu0 %v637_v3  ;;  %v645_v11 = vpack.c.bf16 %v135_v8, %v134_v7  ;;  %v649_v12 = vpack.c.bf16 %v137_v10, %v136_v9  ;;  %v21_v13 = vld [vmem:[%s832_s1 + $0x8] sm:$0xff]  ;;  %v22_v14 = vld [vmem:[%s832_s1 + $0x10] sm:$0xff]  ;;  %v23_v15 = vld [vmem:[%s832_s1 + $0x18] sm:$0xff] }
   0x5   :  { %640 = vmatpush3.bf16.msra.mxu0 %v637_v3  ;;  %vm655_vm2 = vmpackc.low %vm28_vm0, %vm28_vm0  ;;  %v235_v24 = vld [vmem:[%s834_s3] sm:$0x1]  ;;  %v331_v34 = vsub.s32 0, %v330_v33  ;;  %v127_v40 = vld [vmem:[%s835_s0 + $0x8] sm:$0xff] }
   0x6   :  { %642 = vmatprep.subr.bf16.mxu0 %v641_v6  ;;  %646 = vmatprep.subr.bf16.mxu1 %v645_v11  ;;  %v126_v37 = vld [vmem:[%s835_s0] sm:$0xff]  ;;  %v128_v41 = vld [vmem:[%s835_s0 + $0x10] sm:$0xff]  ;;  %vm131_vm5 = vcmp.gt.f32.partialorder %v127_v40, 0.0  ;;  %v129_v48 = vld [vmem:[%s835_s0 + $0x18] sm:$0xff] }
   0x7   :  { %648 = vmatpush3.bf16.msra.mxu1 %v645_v11  ;;  %vm130_vm3 = vcmp.gt.f32.partialorder %v126_v37, 0.0  ;;  %vm132_vm6 = vcmp.gt.f32.partialorder %v128_v41, 0.0  ;;  %vm133_vm9 = vcmp.gt.f32.partialorder %v129_v48, 0.0 }
   0x8   :  { %650 = vmatprep.subr.bf16.mxu1 %v649_v12 }
   0x9   :  { %644 = vmatpush3.bf16.msra.mxu0 %v641_v6 }
   0xa   :  { %653 = vmatprep.subr.bf16.mxu0 %v699_v16 }
   0xb   :  { %652 = vmatpush3.bf16.msra.mxu1 %v649_v12 }
   0xc   :  { %593 = vmatmul.mubr.msk.f32.vlgmr.msra.gmra.mrb[0].mxu0 %vm28_vm0, %v21_v13 }
   0xd   :  { %595 = vmatprep.mubr.msk.f32.mxu0 %vm28_vm0, %v22_v14 }
  0x10   :  { %596 = vmatmul.mubr.msk.f32.gmra.mrb[2].mxu0 %vm28_vm0, %v23_v15 }
  0x11   :  { %620 = vmatprep.mubr.msk.f32.mxu0 %vm700_vm1, %v701_v17 }
  0xdf   :  { %v594_v18 = vpop.f32.mrb[0].mxu0 }
  0xe0   :  { %v107_v19 = vpop.f32.mrb[1].mxu0 }
  0xe1   :  { %v654_v20 = vpack.c.bf16 %v594_v18, %v107_v19  ;;  %606 = vmatprep.mubr.msk.f32.mxu1 %vm28_vm0, %v107_v19 }
  0xe2   :  { %607 = vmatmul.mubr.msk.f32.vlgmr.msra.gmra.mrb[0].mxu1 %vm28_vm0, %v594_v18 }
  0xe3   :  { %v597_v21 = vpop.f32.mrb[2].mxu0  ;;  %656 = vmatpush3.bf16.xpose.msk.msra.mxu0 %vm655_vm2, %v654_v20  ;;  %662 = vmatprep.subr.bf16.mxu1 %v654_v20 }
  0xe4   :  { %v117_v22 = vpop.f32.mrb[3].mxu0  ;;  %664 = vmatpush3.bf16.msra.mxu1 %v654_v20  ;;  %657 = vmatprep.subr.bf16.mxu0 %v699_v16 }
  0xe5   :  { %v658_v23 = vpack.c.bf16 %v597_v21, %v117_v22  ;;  %609 = vmatprep.mubr.msk.f32.mxu1 %vm28_vm0, %v117_v22 }
  0xe6   :  { %610 = vmatmul.mubr.msk.f32.gmra.mrb[2].mxu1 %vm28_vm0, %v597_v21 }
  0xe7   :  { %666 = vmatprep.subr.bf16.mxu1 %v658_v23 }
  0xe8   :  { %668 = vmatpush3.bf16.msra.mxu1 %v658_v23 }
  0xeb   :  { %660 = vmatpush3.bf16.xpose.msk.msra.mxu0 %vm655_vm2, %v658_v23 }
  0xf2   :  { %621 = vmatmul.mubr.msk.f32.vlgmr.msra.gmra.mrb[4].mxu0 %vm28_vm0, %v235_v24 }
 0x1b5   :  { %v608_v26 = vpop.f32.mrb[0].mxu1 }
 0x1b6   :  { %v216_v27 = vpop.f32.mrb[1].mxu1 }
 0x1b7   :  { %311 = vperm.xlu0 %673, %v216_v27  }
 0x1b9   :  { %v611_v28 = vpop.f32.mrb[2].mxu1 }
 0x1ba   :  { %v226_v29 = vpop.f32.mrb[3].mxu1 }
 0x1bb   :  { %316 = vperm.xlu0 %673, %v608_v26   ;;  %321 = vperm.xlu1 %674, %v226_v29  }
 0x1bf   :  { %326 = vperm.xlu1 %674, %v611_v28  }
 0x1c5   :  { %v305_v30 = vpop.f32.mrb[4].mxu0 }
 0x1c6   :  { %v622_v31 = vpop.f32.mrb[5].mxu0  ;;  %v332_v35 = vrot.slane %v305_v30, %v331_v34 }
 0x236   :  { %v312_v36 = vpop.permute.xlu0 %311 }
 0x237   :  { %v333_v38 = vadd.f32 %v332_v35, %v312_v36 }
 0x239   :  { %v341_v39 = vmul.f32 0.2, %v333_v38  ;;  %vm337_vm4 = vcmp.gt.f32.partialorder %v333_v38, 0.0 }
 0x23a   :  { %v317_v42 = vpop.permute.xlu0 %316  ;;  %v322_v43 = vpop.permute.xlu1 %321 }
 0x23b   :  { %v334_v44 = vadd.f32 %v332_v35, %v317_v42  ;;  %v335_v45 = vadd.f32 %v332_v35, %v322_v43  ;;  %v345_v46 = vsel %vm337_vm4, %v333_v38, %v341_v39 }
 0x23c   :  { %v349_v47 = vsel %vm130_vm3, %v345_v46, -1e+30 }
 0x23d   :  { %v342_v49 = vmul.f32 0.2, %v334_v44  ;;  %v343_v50 = vmul.f32 0.2, %v335_v45  ;;  %v353_v51 = vsel %vm28_vm0, %v349_v47, -inf  ;;  %vm338_vm7 = vcmp.gt.f32.partialorder %v334_v44, 0.0 }
 0x23e   :  { %v327_v52 = vpop.permute.xlu1 %326  ;;  %354 = vmax.xlane.f32.xlu0 %v353_v51  ;;  %vm339_vm8 = vcmp.gt.f32.partialorder %v335_v45, 0.0 }
 0x23f   :  { %v336_v53 = vadd.f32 %v332_v35, %v327_v52  ;;  %v346_v54 = vsel %vm338_vm7, %v334_v44, %v342_v49  ;;  %v347_v55 = vsel %vm339_vm8, %v335_v45, %v343_v50 }
 0x240   :  { %v350_v56 = vsel %vm131_vm5, %v346_v54, -1e+30  ;;  %v351_v57 = vsel %vm132_vm6, %v347_v55, -1e+30 }
 0x241   :  { %v344_v58 = vmul.f32 0.2, %v336_v53  ;;  %v356_v59 = vsel %vm28_vm0, %v350_v56, -inf  ;;  %v359_v60 = vsel %vm28_vm0, %v351_v57, -inf  ;;  %vm340_vm10 = vcmp.gt.f32.partialorder %v336_v53, 0.0 }
 0x242   :  { %357 = vmax.xlane.f32.xlu1 %v356_v59  ;;  %360 = vmax.xlane.f32.xlu0 %v359_v60 }
 0x243   :  { %v348_v61 = vsel %vm340_vm10, %v336_v53, %v344_v58 }
 0x244   :  { %v352_v62 = vsel %vm133_vm9, %v348_v61, -1e+30 }
 0x245   :  { %v362_v63 = vsel %vm28_vm0, %v352_v62, -inf }
 0x246   :  { %363 = vmax.xlane.f32.xlu0 %v362_v63 }
 0x2cb   :  { %v355_v0 = vpop.xlane.xlu0 %354 }
 0x2cc   :  { %v365_v1 = vsub.f32 %v349_v47, %v355_v0 }
 0x2ce   :  { %v369_v2 = vmul.f32 1.442695, %v365_v1 }
 0x2cf   :  { %v358_v3 = vpop.xlane.xlu1 %357  ;;  %v361_v4 = vpop.xlane.xlu0 %360 }
 0x2d0   :  { %675 = vpow2.f32 %v369_v2  ;;  %v366_v5 = vsub.f32 %v350_v56, %v358_v3  ;;  %v367_v6 = vsub.f32 %v351_v57, %v361_v4 }
 0x2d2   :  { %v371_v7 = vmul.f32 1.442695, %v366_v5  ;;  %v373_v8 = vmul.f32 1.442695, %v367_v6 }
 0x2d3   :  { %v364_v9 = vpop.xlane.xlu0 %363 }
 0x2d4   :  { %677 = vpow2.f32 %v371_v7  ;;  %v368_v10 = vsub.f32 %v352_v62, %v364_v9 }
 0x2d5   :  { %679 = vpow2.f32 %v373_v8 }
 0x2d6   :  { %v375_v11 = vmul.f32 1.442695, %v368_v10 }
 0x2d8   :  { %681 = vpow2.f32 %v375_v11 }
 0x2da   :  { %v676_v12 = vpop.eup %675 }
 0x2db   :  { %v377_v13 = vsel %vm130_vm3, %v676_v12, 0.0 }
 0x2dc   :  { %v381_v14 = vsel %vm28_vm0, %v377_v13, 0.0 }
 0x2dd   :  { %382 = vadd.xlane.f32.xlu1 %v381_v14 }
 0x2de   :  { %v678_v15 = vpop.eup %677 }
 0x2df   :  { %v680_v16 = vpop.eup %679  ;;  %v378_v17 = vsel %vm131_vm5, %v678_v15, 0.0 }
 0x2e0   :  { %v384_v18 = vsel %vm28_vm0, %v378_v17, 0.0  ;;  %v379_v19 = vsel %vm132_vm6, %v680_v16, 0.0 }
 0x2e1   :  { %385 = vadd.xlane.f32.xlu0 %v384_v18  ;;  %v387_v20 = vsel %vm28_vm0, %v379_v19, 0.0 }
 0x2e2   :  { %v682_v21 = vpop.eup %681  ;;  %388 = vadd.xlane.f32.xlu1 %v387_v20 }
 0x2e3   :  { %v380_v22 = vsel %vm133_vm9, %v682_v21, 0.0 }
 0x2e4   :  { %v390_v23 = vsel %vm28_vm0, %v380_v22, 0.0 }
 0x2e5   :  { %391 = vadd.xlane.f32.xlu0 %v390_v23 }
 0x36a   :  { %v383_v24 = vpop.xlane.xlu1 %382 }
 0x36b   :  { %v393_v25 = vmax.f32 %v383_v24, 1e-20 }
 0x36d   :  { %683 = vrcp.f32 %v393_v25 }
 0x36e   :  { %v386_v26 = vpop.xlane.xlu0 %385 }
 0x36f   :  { %v389_v27 = vpop.xlane.xlu1 %388  ;;  %v394_v28 = vmax.f32 %v386_v26, 1e-20 }
 0x370   :  { %v395_v29 = vmax.f32 %v389_v27, 1e-20 }
 0x371   :  { %685 = vrcp.f32 %v394_v28 }
 0x372   :  { %687 = vrcp.f32 %v395_v29  ;;  %v392_v30 = vpop.xlane.xlu0 %391 }
 0x373   :  { %v396_v31 = vmax.f32 %v392_v30, 1e-20 }
 0x375   :  { %689 = vrcp.f32 %v396_v31 }
 0x377   :  { %v684_v32 = vpop.eup %683 }
 0x378   :  { %v398_v33 = vmul.f32 %v684_v32, %v377_v13 }
 0x37a   :  { %631 = vmatprep.mubr.msk.f32.mxu1 %vm28_vm0, %v398_v33 }
 0x37b   :  { %v686_v34 = vpop.eup %685 }
 0x37c   :  { %v688_v35 = vpop.eup %687  ;;  %v400_v36 = vmul.f32 %v686_v34, %v378_v17 }
 0x37d   :  { %v402_v37 = vmul.f32 %v688_v35, %v379_v19 }
 0x37e   :  { %632 = vmatmul.mubr.msk.f32.vlgmr.msra.gmra.mrb[4].mxu1 %vm28_vm0, %v400_v36 }
 0x37f   :  { %v690_v38 = vpop.eup %689  ;;  %634 = vmatprep.mubr.msk.f32.mxu1 %vm28_vm0, %v402_v37 }
 0x380   :  { %v404_v39 = vmul.f32 %v690_v38, %v380_v22 }
 0x382   :  { %635 = vmatmul.mubr.msk.f32.gmra.mrb[6].mxu1 %vm28_vm0, %v404_v39 }
 0x451   :  { %v633_v40 = vpop.f32.mrb[4].mxu1 }
 0x452   :  { %v507_v41 = vmin.f32 %v633_v40, 0.0  ;;  %v483_v42 = vpop.f32.mrb[5].mxu1  ;;  %vm503_vm11 = vcmp.gt.f32.partialorder %v633_v40, 0.0 }
 0x453   :  { %v506_v43 = vmin.f32 %v483_v42, 0.0  ;;  %vm502_vm12 = vcmp.gt.f32.partialorder %v483_v42, 0.0 }
 0x454   :  { %v512_v44 = vmul.f32 1.442695, %v507_v41 }
 0x455   :  { %v510_v45 = vmul.f32 1.442695, %v506_v43  ;;  %v636_v46 = vpop.f32.mrb[6].mxu1 }
 0x456   :  { %691 = vpow2.f32 %v512_v44  ;;  %v509_v47 = vmin.f32 %v636_v46, 0.0  ;;  %v493_v48 = vpop.f32.mrb[7].mxu1  ;;  %vm505_vm13 = vcmp.gt.f32.partialorder %v636_v46, 0.0 }
 0x457   :  { %693 = vpow2.f32 %v510_v45  ;;  %v508_v49 = vmin.f32 %v493_v48, 0.0  ;;  %vm504_vm14 = vcmp.gt.f32.partialorder %v493_v48, 0.0 }
 0x458   :  { %v516_v50 = vmul.f32 1.442695, %v509_v47 }
 0x459   :  { %v514_v51 = vmul.f32 1.442695, %v508_v49 }
 0x45a   :  { %695 = vpow2.f32 %v516_v50 }
 0x45b   :  { %697 = vpow2.f32 %v514_v51 }
 0x460   :  { %v692_v52 = vpop.eup %691 }
 0x461   :  { %v694_v53 = vpop.eup %693  ;;  %v552_v54 = vadd.f32 -1.0, %v692_v52 }
 0x462   :  { %v551_v55 = vadd.f32 -1.0, %v694_v53 }
 0x463   :  { %v523_v56 = vsel %vm503_vm11, %v633_v40, %v552_v54 }
 0x464   :  { %v696_v57 = vpop.eup %695  ;;  %527 = vst.msk [vmem:[%s836_s5 + $0x8] sm:$0xff] %vm28_vm0, %v523_v56  ;;  %v522_v58 = vsel %vm502_vm12, %v483_v42, %v551_v55 }
 0x465   :  { %v698_v59 = vpop.eup %697  ;;  %526 = vst.msk [vmem:[%s836_s5] sm:$0xff] %vm28_vm0, %v522_v58  ;;  %v554_v60 = vadd.f32 -1.0, %v696_v57 }
 0x466   :  { %v553_v61 = vadd.f32 -1.0, %v698_v59 }
 0x467   :  { %v525_v62 = vsel %vm505_vm13, %v636_v46, %v554_v60 }
 0x468   :  { %529 = vst.msk [vmem:[%s836_s5 + $0x18] sm:$0xff] %vm28_vm0, %v525_v62  ;;  %v524_v63 = vsel %vm504_vm14, %v493_v48, %v553_v61 }
 0x469   :  { %528 = vst.msk [vmem:[%s836_s5 + $0x10] sm:$0xff] %vm28_vm0, %v524_v63 }

// kernel: gat2_forward.4
= control target key start
LH: loop header
LB: loop body
LE: loop exit
PB: predicated region body
PF: predicated region fallthrough
CT: control target
= control target key end

     0   :  { %vm26_vm0 = vcmask 130048   ;;  %v688_v13 = vmov 0.0|0.0   ;;  %vm689_vm1 = vmmov 0   ;;  %v690_v14 = vmov 0.0   ;;  %s814_s2 = inlined_call_operand.vmem [shape: f32[16,32], index: 2, kind: input, shape index: {}]   ;;  %s815_s1 = inlined_call_operand.vmem [shape: f32[32,16], index: 1, kind: input, shape index: {}]   ;;  %s816_s4 = inlined_call_operand.vmem [shape: f32[32,1], index: 4, kind: input, shape index: {}]   ;;  %s817_s3 = inlined_call_operand.vmem [shape: f32[1,32], index: 3, kind: input, shape index: {}]   ;;  %s818_s0 = inlined_call_operand.vmem [shape: f32[32,32], index: 0, kind: input, shape index: {}]   ;;  %s819_s5 = inlined_call_operand.vmem [shape: f32[32,32], index: 5, kind: output, shape index: {}]  }
   0x1   :  { %v24_v0 = vld [vmem:[%s814_s2] sm:$0xff]  ;;  %v25_v1 = vld [vmem:[%s814_s2 + $0x8] sm:$0xff]  ;;  %v134_v6 = vld [vmem:[%s816_s4 + $0x10] sm:$0xff]  ;;  %vm136_vm2 = vcmask 261120   ;;  %v691_v22 = vmov 0   ;;  %v328_v29 = vlaneseq }
   0x2   :  { %v20_v2 = vld [vmem:[%s815_s1] sm:$0xff]  ;;  %v630_v3 = vpack.c.bf16 %v25_v1, %v24_v0  ;;  %v133_v5 = vld [vmem:[%s816_s4 + $0x8] sm:$0xff]  ;;  %v135_v8 = vld [vmem:[%s816_s4 + $0x18] sm:$0xff]  ;;  %662 = vset.pattern.permute.xlu0 %v691_v22  ;;  %663 = vset.pattern.permute.xlu1 %v691_v22 }
   0x3   :  { %585 = vmatprep.mubr.msk.f32.mxu0 %vm26_vm0, %v20_v2  ;;  %v132_v4 = vld [vmem:[%s816_s4] sm:$0xff]  ;;  %v21_v9 = vld [vmem:[%s815_s1 + $0x8] sm:$0xff]  ;;  %v638_v10 = vpack.c.bf16 %v135_v8, %v134_v6  ;;  %v22_v11 = vld [vmem:[%s815_s1 + $0x10] sm:$0xff]  ;;  %v329_v30 = vshrl.u32 %v328_v29, 7 }
   0x4   :  { %631 = vmatprep.subr.bf16.mxu0 %v630_v3  ;;  %v634_v7 = vpack.c.bf16 %v133_v5, %v132_v4  ;;  %v23_v12 = vld [vmem:[%s815_s1 + $0x18] sm:$0xff]  ;;  %vm644_vm3 = vmpackc.low %vm136_vm2, %vm136_vm2  ;;  %v234_v21 = vld [vmem:[%s817_s3] sm:$0x1] }
   0x5   :  { %633 = vmatpush3.bf16.msra.mxu0 %v630_v3  ;;  %v330_v31 = vsub.s32 0, %v329_v30  ;;  %v124_v34 = vld [vmem:[%s818_s0] sm:$0xff]  ;;  %v125_v37 = vld [vmem:[%s818_s0 + $0x8] sm:$0xff]  ;;  %v126_v38 = vld [vmem:[%s818_s0 + $0x10] sm:$0xff] }
   0x6   :  { %635 = vmatprep.subr.bf16.mxu1 %v634_v7  ;;  %642 = vmatprep.subr.bf16.mxu0 %v688_v13  ;;  %vm128_vm4 = vcmp.gt.f32.partialorder %v124_v34, 0.0  ;;  %vm129_vm6 = vcmp.gt.f32.partialorder %v125_v37, 0.0  ;;  %vm130_vm7 = vcmp.gt.f32.partialorder %v126_v38, 0.0  ;;  %v127_v45 = vld [vmem:[%s818_s0 + $0x18] sm:$0xff] }
   0x7   :  { %637 = vmatpush3.bf16.msra.mxu1 %v634_v7  ;;  %vm131_vm10 = vcmp.gt.f32.partialorder %v127_v45, 0.0 }
   0x8   :  { %586 = vmatmul.mubr.msk.f32.vlgmr.msra.gmra.mrb[0].mxu0 %vm26_vm0, %v21_v9  ;;  %639 = vmatprep.subr.bf16.mxu1 %v638_v10 }
   0x9   :  { %588 = vmatprep.mubr.msk.f32.mxu0 %vm26_vm0, %v22_v11 }
   0xb   :  { %641 = vmatpush3.bf16.msra.mxu1 %v638_v10 }
   0xc   :  { %589 = vmatmul.mubr.msk.f32.gmra.mrb[2].mxu0 %vm26_vm0, %v23_v12 }
   0xd   :  { %613 = vmatprep.mubr.msk.f32.mxu0 %vm689_vm1, %v690_v14 }
  0xdb   :  { %v587_v15 = vpop.f32.mrb[0].mxu0 }
  0xdc   :  { %v105_v16 = vpop.f32.mrb[1].mxu0 }
  0xdd   :  { %v643_v17 = vpack.c.bf16 %v587_v15, %v105_v16  ;;  %599 = vmatprep.mubr.msk.f32.mxu1 %vm136_vm2, %v105_v16 }
  0xde   :  { %600 = vmatmul.mubr.msk.f32.vlgmr.msra.gmra.mrb[0].mxu1 %vm136_vm2, %v587_v15 }
  0xdf   :  { %v590_v18 = vpop.f32.mrb[2].mxu0  ;;  %645 = vmatpush3.bf16.xpose.msk.msra.mxu0 %vm644_vm3, %v643_v17  ;;  %651 = vmatprep.subr.bf16.mxu1 %v643_v17 }
  0xe0   :  { %v115_v19 = vpop.f32.mrb[3].mxu0  ;;  %653 = vmatpush3.bf16.msra.mxu1 %v643_v17  ;;  %646 = vmatprep.subr.bf16.mxu0 %v688_v13 }
  0xe1   :  { %v647_v20 = vpack.c.bf16 %v590_v18, %v115_v19  ;;  %602 = vmatprep.mubr.msk.f32.mxu1 %vm136_vm2, %v115_v19 }
  0xe2   :  { %603 = vmatmul.mubr.msk.f32.gmra.mrb[2].mxu1 %vm136_vm2, %v590_v18 }
  0xe3   :  { %655 = vmatprep.subr.bf16.mxu1 %v647_v20 }
  0xe4   :  { %657 = vmatpush3.bf16.msra.mxu1 %v647_v20 }
  0xe7   :  { %649 = vmatpush3.bf16.xpose.msk.msra.mxu0 %vm644_vm3, %v647_v20 }
  0xee   :  { %614 = vmatmul.mubr.msk.f32.vlgmr.msra.gmra.mrb[4].mxu0 %vm136_vm2, %v234_v21 }
 0x1b1   :  { %v601_v23 = vpop.f32.mrb[0].mxu1 }
 0x1b2   :  { %v215_v24 = vpop.f32.mrb[1].mxu1 }
 0x1b3   :  { %310 = vperm.xlu0 %662, %v215_v24  }
 0x1b5   :  { %v604_v25 = vpop.f32.mrb[2].mxu1 }
 0x1b6   :  { %v225_v26 = vpop.f32.mrb[3].mxu1 }
 0x1b7   :  { %315 = vperm.xlu0 %662, %v601_v23   ;;  %320 = vperm.xlu1 %663, %v225_v26  }
 0x1bb   :  { %325 = vperm.xlu1 %663, %v604_v25  }
 0x1c1   :  { %v304_v27 = vpop.f32.mrb[4].mxu0 }
 0x1c2   :  { %v615_v28 = vpop.f32.mrb[5].mxu0  ;;  %v331_v32 = vrot.slane %v304_v27, %v330_v31 }
 0x232   :  { %v311_v33 = vpop.permute.xlu0 %310 }
 0x233   :  { %v332_v35 = vadd.f32 %v331_v32, %v311_v33 }
 0x235   :  { %v340_v36 = vmul.f32 0.2, %v332_v35  ;;  %vm336_vm5 = vcmp.gt.f32.partialorder %v332_v35, 0.0 }
 0x236   :  { %v316_v39 = vpop.permute.xlu0 %315  ;;  %v321_v40 = vpop.permute.xlu1 %320 }
 0x237   :  { %v333_v41 = vadd.f32 %v331_v32, %v316_v39  ;;  %v334_v42 = vadd.f32 %v331_v32, %v321_v40  ;;  %v344_v43 = vsel %vm336_vm5, %v332_v35, %v340_v36 }
 0x238   :  { %v348_v44 = vsel %vm128_vm4, %v344_v43, -1e+30 }
 0x239   :  { %v341_v46 = vmul.f32 0.2, %v333_v41  ;;  %v342_v47 = vmul.f32 0.2, %v334_v42  ;;  %v352_v48 = vsel %vm136_vm2, %v348_v44, -inf  ;;  %vm337_vm8 = vcmp.gt.f32.partialorder %v333_v41, 0.0 }
 0x23a   :  { %v326_v49 = vpop.permute.xlu1 %325  ;;  %353 = vmax.xlane.f32.xlu0 %v352_v48  ;;  %vm338_vm9 = vcmp.gt.f32.partialorder %v334_v42, 0.0 }
 0x23b   :  { %v335_v50 = vadd.f32 %v331_v32, %v326_v49  ;;  %v345_v51 = vsel %vm337_vm8, %v333_v41, %v341_v46  ;;  %v346_v52 = vsel %vm338_vm9, %v334_v42, %v342_v47 }
 0x23c   :  { %v349_v53 = vsel %vm129_vm6, %v345_v51, -1e+30  ;;  %v350_v54 = vsel %vm130_vm7, %v346_v52, -1e+30 }
 0x23d   :  { %v343_v55 = vmul.f32 0.2, %v335_v50  ;;  %v355_v56 = vsel %vm136_vm2, %v349_v53, -inf  ;;  %v358_v57 = vsel %vm136_vm2, %v350_v54, -inf  ;;  %vm339_vm11 = vcmp.gt.f32.partialorder %v335_v50, 0.0 }
 0x23e   :  { %356 = vmax.xlane.f32.xlu1 %v355_v56  ;;  %359 = vmax.xlane.f32.xlu0 %v358_v57 }
 0x23f   :  { %v347_v58 = vsel %vm339_vm11, %v335_v50, %v343_v55 }
 0x240   :  { %v351_v59 = vsel %vm131_vm10, %v347_v58, -1e+30 }
 0x241   :  { %v361_v60 = vsel %vm136_vm2, %v351_v59, -inf }
 0x242   :  { %362 = vmax.xlane.f32.xlu0 %v361_v60 }
 0x2c7   :  { %v354_v61 = vpop.xlane.xlu0 %353 }
 0x2c8   :  { %v364_v62 = vsub.f32 %v348_v44, %v354_v61 }
 0x2ca   :  { %v368_v63 = vmul.f32 1.442695, %v364_v62 }
 0x2cb   :  { %v357_v0 = vpop.xlane.xlu1 %356  ;;  %v360_v1 = vpop.xlane.xlu0 %359 }
 0x2cc   :  { %664 = vpow2.f32 %v368_v63  ;;  %v365_v2 = vsub.f32 %v349_v53, %v357_v0  ;;  %v366_v3 = vsub.f32 %v350_v54, %v360_v1 }
 0x2ce   :  { %v370_v4 = vmul.f32 1.442695, %v365_v2  ;;  %v372_v5 = vmul.f32 1.442695, %v366_v3 }
 0x2cf   :  { %v363_v6 = vpop.xlane.xlu0 %362 }
 0x2d0   :  { %666 = vpow2.f32 %v370_v4  ;;  %v367_v7 = vsub.f32 %v351_v59, %v363_v6 }
 0x2d1   :  { %668 = vpow2.f32 %v372_v5 }
 0x2d2   :  { %v374_v8 = vmul.f32 1.442695, %v367_v7 }
 0x2d4   :  { %670 = vpow2.f32 %v374_v8 }
 0x2d6   :  { %v665_v9 = vpop.eup %664 }
 0x2d7   :  { %v376_v10 = vsel %vm128_vm4, %v665_v9, 0.0 }
 0x2d8   :  { %v380_v11 = vsel %vm136_vm2, %v376_v10, 0.0 }
 0x2d9   :  { %381 = vadd.xlane.f32.xlu1 %v380_v11 }
 0x2da   :  { %v667_v12 = vpop.eup %666 }
 0x2db   :  { %v669_v13 = vpop.eup %668  ;;  %v377_v14 = vsel %vm129_vm6, %v667_v12, 0.0 }
 0x2dc   :  { %v383_v15 = vsel %vm136_vm2, %v377_v14, 0.0  ;;  %v378_v16 = vsel %vm130_vm7, %v669_v13, 0.0 }
 0x2dd   :  { %384 = vadd.xlane.f32.xlu0 %v383_v15  ;;  %v386_v17 = vsel %vm136_vm2, %v378_v16, 0.0 }
 0x2de   :  { %v671_v18 = vpop.eup %670  ;;  %387 = vadd.xlane.f32.xlu1 %v386_v17 }
 0x2df   :  { %v379_v19 = vsel %vm131_vm10, %v671_v18, 0.0 }
 0x2e0   :  { %v389_v20 = vsel %vm136_vm2, %v379_v19, 0.0 }
 0x2e1   :  { %390 = vadd.xlane.f32.xlu0 %v389_v20 }
 0x366   :  { %v382_v21 = vpop.xlane.xlu1 %381 }
 0x367   :  { %v392_v22 = vmax.f32 %v382_v21, 1e-20 }
 0x369   :  { %672 = vrcp.f32 %v392_v22 }
 0x36a   :  { %v385_v23 = vpop.xlane.xlu0 %384 }
 0x36b   :  { %v388_v24 = vpop.xlane.xlu1 %387  ;;  %v393_v25 = vmax.f32 %v385_v23, 1e-20 }
 0x36c   :  { %v394_v26 = vmax.f32 %v388_v24, 1e-20 }
 0x36d   :  { %674 = vrcp.f32 %v393_v25 }
 0x36e   :  { %676 = vrcp.f32 %v394_v26  ;;  %v391_v27 = vpop.xlane.xlu0 %390 }
 0x36f   :  { %v395_v28 = vmax.f32 %v391_v27, 1e-20 }
 0x371   :  { %678 = vrcp.f32 %v395_v28 }
 0x373   :  { %v673_v29 = vpop.eup %672 }
 0x374   :  { %v397_v30 = vmul.f32 %v673_v29, %v376_v10 }
 0x376   :  { %624 = vmatprep.mubr.msk.f32.mxu1 %vm136_vm2, %v397_v30 }
 0x377   :  { %v675_v31 = vpop.eup %674 }
 0x378   :  { %v677_v32 = vpop.eup %676  ;;  %v399_v33 = vmul.f32 %v675_v31, %v377_v14 }
 0x379   :  { %v401_v34 = vmul.f32 %v677_v32, %v378_v16 }
 0x37a   :  { %625 = vmatmul.mubr.msk.f32.vlgmr.msra.gmra.mrb[4].mxu1 %vm136_vm2, %v399_v33 }
 0x37b   :  { %v679_v35 = vpop.eup %678  ;;  %627 = vmatprep.mubr.msk.f32.mxu1 %vm136_vm2, %v401_v34 }
 0x37c   :  { %v403_v36 = vmul.f32 %v679_v35, %v379_v19 }
 0x37e   :  { %628 = vmatmul.mubr.msk.f32.gmra.mrb[6].mxu1 %vm136_vm2, %v403_v36 }
 0x44d   :  { %v626_v37 = vpop.f32.mrb[4].mxu1 }
 0x44e   :  { %v506_v38 = vmin.f32 %v626_v37, 0.0  ;;  %v482_v39 = vpop.f32.mrb[5].mxu1  ;;  %vm502_vm12 = vcmp.gt.f32.partialorder %v626_v37, 0.0 }
 0x44f   :  { %v505_v40 = vmin.f32 %v482_v39, 0.0  ;;  %vm501_vm13 = vcmp.gt.f32.partialorder %v482_v39, 0.0 }
 0x450   :  { %v511_v41 = vmul.f32 1.442695, %v506_v38 }
 0x451   :  { %v509_v42 = vmul.f32 1.442695, %v505_v40  ;;  %v629_v43 = vpop.f32.mrb[6].mxu1 }
 0x452   :  { %680 = vpow2.f32 %v511_v41  ;;  %v508_v44 = vmin.f32 %v629_v43, 0.0  ;;  %v492_v45 = vpop.f32.mrb[7].mxu1  ;;  %vm504_vm14 = vcmp.gt.f32.partialorder %v629_v43, 0.0 }
 0x453   :  { %682 = vpow2.f32 %v509_v42  ;;  %v507_v46 = vmin.f32 %v492_v45, 0.0  ;;  %vm503_vm15 = vcmp.gt.f32.partialorder %v492_v45, 0.0 }
 0x454   :  { %v515_v47 = vmul.f32 1.442695, %v508_v44 }
 0x455   :  { %v513_v48 = vmul.f32 1.442695, %v507_v46 }
 0x456   :  { %684 = vpow2.f32 %v515_v47 }
 0x457   :  { %686 = vpow2.f32 %v513_v48 }
 0x45c   :  { %v681_v49 = vpop.eup %680 }
 0x45d   :  { %v683_v50 = vpop.eup %682  ;;  %v551_v51 = vadd.f32 -1.0, %v681_v49 }
 0x45e   :  { %v550_v52 = vadd.f32 -1.0, %v683_v50 }
 0x45f   :  { %v522_v53 = vsel %vm502_vm12, %v626_v37, %v551_v51 }
 0x460   :  { %v685_v54 = vpop.eup %684  ;;  %526 = vst.msk [vmem:[%s819_s5 + $0x8] sm:$0xff] %vm136_vm2, %v522_v53  ;;  %v521_v55 = vsel %vm501_vm13, %v482_v39, %v550_v52 }
 0x461   :  { %v687_v56 = vpop.eup %686  ;;  %525 = vst.msk [vmem:[%s819_s5] sm:$0xff] %vm136_vm2, %v521_v55  ;;  %v553_v57 = vadd.f32 -1.0, %v685_v54 }
 0x462   :  { %v552_v58 = vadd.f32 -1.0, %v687_v56 }
 0x463   :  { %v524_v59 = vsel %vm504_vm14, %v629_v43, %v553_v57 }
 0x464   :  { %528 = vst.msk [vmem:[%s819_s5 + $0x18] sm:$0xff] %vm136_vm2, %v524_v59  ;;  %v523_v60 = vsel %vm503_vm15, %v492_v45, %v552_v58 }
 0x465   :  { %527 = vst.msk [vmem:[%s819_s5 + $0x10] sm:$0xff] %vm136_vm2, %v523_v60 }

// kernel: gat2_forward.7
= control target key start
LH: loop header
LB: loop body
LE: loop exit
PB: predicated region body
PF: predicated region fallthrough
CT: control target
= control target key end

     0   :  { %vm45_vm0 = vcmask 785408   ;;  %vm155_vm1 = vcmask 64512   ;;  %vm257_vm2 = vcmask 7168   ;;  %s462_s1 = inlined_call_operand.vmem [shape: f32[96,8], index: 1, kind: input, shape index: {}]   ;;  %s463_s0 = inlined_call_operand.vmem [shape: f32[32,96], index: 0, kind: input, shape index: {}]   ;;  %s464_s3 = inlined_call_operand.vmem [shape: f32[8,1], index: 3, kind: input, shape index: {}]   ;;  %s465_s4 = inlined_call_operand.<no memory space> [shape: f32[1,1], index: 4, kind: input, shape index: {}]   ;;  %s466_s2 = inlined_call_operand.vmem [shape: f32[1,8], index: 2, kind: input, shape index: {}]   ;;  %s467_s5 = inlined_call_operand.vmem [shape: f32[32,1], index: 5, kind: output, shape index: {}]  }
   0x1   :  { %v26_v0 = vld [vmem:[%s462_s1] sm:$0xff]  ;;  %v27_v1 = vld [vmem:[%s462_s1 + $0x8] sm:$0xff]  ;;  %v28_v2 = vld [vmem:[%s462_s1 + $0x10] sm:$0xff]  ;;  %v10_v23 = vstv %s465_s4 }
   0x2   :  { %v335_v3 = vpack.c.bf16 %v27_v1, %v26_v0  ;;  %v29_v4 = vld [vmem:[%s462_s1 + $0x18] sm:$0xff]  ;;  %v30_v6 = vld [vmem:[%s462_s1 + $0x20] sm:$0xff]  ;;  %v31_v7 = vld [vmem:[%s462_s1 + $0x28] sm:$0xff]  ;;  %11 = vst [vmem:[#allocation2] sm:$0x1] %v10_v23 }
   0x3   :  { %v339_v5 = vpack.c.bf16 %v29_v4, %v28_v2  ;;  %v22_v8 = vld [vmem:[%s463_s0] sm:$0xff]  ;;  %v343_v9 = vpack.c.bf16 %v31_v7, %v30_v6  ;;  %v32_v10 = vld [vmem:[%s462_s1 + $0x30] sm:$0xff]  ;;  %v33_v11 = vld [vmem:[%s462_s1 + $0x38] sm:$0xff] }
   0x4   :  { %336 = vmatprep.subr.bf16.mxu0 %v335_v3  ;;  %321 = vmatprep.mubr.msk.f32.mxu0 %vm45_vm0, %v22_v8  ;;  %v347_v12 = vpack.c.bf16 %v33_v11, %v32_v10  ;;  %v34_v13 = vld [vmem:[%s462_s1 + $0x40] sm:$0xff]  ;;  %v35_v14 = vld [vmem:[%s462_s1 + $0x48] sm:$0xff]  ;;  %v36_v16 = vld [vmem:[%s462_s1 + $0x50] sm:$0xff] }
   0x5   :  { %338 = vmatpush3.bf16.msra.mxu0 %v335_v3  ;;  %v351_v15 = vpack.c.bf16 %v35_v14, %v34_v13  ;;  %v37_v17 = vld [vmem:[%s462_s1 + $0x58] sm:$0xff]  ;;  %v23_v19 = vld [vmem:[%s463_s0 + $0x8] sm:$0xff]  ;;  %v24_v20 = vld [vmem:[%s463_s0 + $0x10] sm:$0xff] }
   0x6   :  { %340 = vmatprep.subr.bf16.mxu0 %v339_v5  ;;  %v355_v18 = vpack.c.bf16 %v37_v17, %v36_v16  ;;  %v25_v21 = vld [vmem:[%s463_s0 + $0x18] sm:$0xff]  ;;  %v147_v22 = vld [vmem:[%s464_s3] sm:$0xff] }
   0x7   :  { %327 = vmatprep.subr.mxu1 %v147_v22  ;;  %v266_v24 = vld [vmem:[%s466_s2] ss:$0 sm:$0xff] }
   0x8   :  { %328 = vmatpush3.msra.mxu1 %v147_v22 }
   0x9   :  { %342 = vmatpush3.bf16.msra.mxu0 %v339_v5  ;;  %v271_v37 = vld [vmem:[#allocation2] ss:$0 sm:$0xff] }
   0xa   :  { %344 = vmatprep.subr.bf16.mxu0 %v343_v9 }
   0xd   :  { %346 = vmatpush3.bf16.msra.mxu0 %v343_v9 }
   0xe   :  { %348 = vmatprep.subr.bf16.mxu0 %v347_v12 }
  0x11   :  { %350 = vmatpush3.bf16.msra.mxu0 %v347_v12 }
  0x12   :  { %352 = vmatprep.subr.bf16.mxu0 %v351_v15 }
  0x15   :  { %354 = vmatpush3.bf16.msra.mxu0 %v351_v15 }
  0x16   :  { %356 = vmatprep.subr.bf16.mxu0 %v355_v18 }
  0x19   :  { %358 = vmatpush3.bf16.msra.mxu0 %v355_v18 }
  0x1c   :  { %322 = vmatmul.mubr.msk.f32.vlgmr.msra.gmra.mrb[0].mxu0 %vm45_vm0, %v23_v19 }
  0x1d   :  { %324 = vmatprep.mubr.msk.f32.mxu0 %vm45_vm0, %v24_v20 }
  0x20   :  { %325 = vmatmul.mubr.msk.f32.gmra.mrb[2].mxu0 %vm45_vm0, %v25_v21 }
  0xef   :  { %v323_v25 = vpop.f32.mrb[0].mxu0 }
  0xf0   :  { %v130_v26 = vadd.f32 %v323_v25, %v266_v24  ;;  %v124_v27 = vpop.f32.mrb[1].mxu0 }
  0xf1   :  { %v125_v28 = vadd.f32 %v266_v24, %v124_v27 }
  0xf2   :  { %v144_v31 = vmax.f32 %v130_v26, 0.0 }
  0xf3   :  { %v143_v29 = vmax.f32 %v125_v28, 0.0  ;;  %v326_v30 = vpop.f32.mrb[2].mxu0 }
  0xf4   :  { %v140_v32 = vadd.f32 %v326_v30, %v266_v24  ;;  %v134_v33 = vpop.f32.mrb[3].mxu0 }
  0xf5   :  { %v135_v34 = vadd.f32 %v266_v24, %v134_v33  ;;  %329 = vmatprep.mubr.msk.f32.mxu1 %vm155_vm1, %v143_v29 }
  0xf6   :  { %330 = vmatmul.mubr.msk.f32.vlgmr.msra.gmra.mrb[0].mxu1 %vm155_vm1, %v144_v31  ;;  %v146_v36 = vmax.f32 %v140_v32, 0.0 }
  0xf7   :  { %v145_v35 = vmax.f32 %v135_v34, 0.0 }
  0xf9   :  { %332 = vmatprep.mubr.msk.f32.mxu1 %vm155_vm1, %v145_v35 }
  0xfa   :  { %333 = vmatmul.mubr.msk.f32.gmra.mrb[2].mxu1 %vm155_vm1, %v146_v36 }
 0x1c9   :  { %v331_v38 = vpop.f32.mrb[0].mxu1 }
 0x1ca   :  { %v240_v39 = vadd.f32 %v331_v38, %v271_v37  ;;  %v234_v40 = vpop.f32.mrb[1].mxu1 }
 0x1cb   :  { %v235_v41 = vadd.f32 %v271_v37, %v234_v40 }
 0x1cc   :  { %v254_v42 = vmax.f32 %v240_v39, 0.0 }
 0x1cd   :  { %v253_v43 = vmax.f32 %v235_v41, 0.0  ;;  %v334_v44 = vpop.f32.mrb[2].mxu1 }
 0x1ce   :  { %259 = vst.msk [vmem:[%s467_s5 + $0x8] sm:$0xff] %vm257_vm2, %v254_v42  ;;  %v250_v45 = vadd.f32 %v334_v44, %v271_v37  ;;  %v244_v46 = vpop.f32.mrb[3].mxu1 }
 0x1cf   :  { %258 = vst.msk [vmem:[%s467_s5] sm:$0xff] %vm257_vm2, %v253_v43  ;;  %v245_v47 = vadd.f32 %v271_v37, %v244_v46 }
 0x1d0   :  { %v256_v48 = vmax.f32 %v250_v45, 0.0 }
 0x1d1   :  { %v255_v49 = vmax.f32 %v245_v47, 0.0 }
 0x1d2   :  { %261 = vst.msk [vmem:[%s467_s5 + $0x18] sm:$0xff] %vm257_vm2, %v256_v48 }
 0x1d3   :  { %260 = vst.msk [vmem:[%s467_s5 + $0x10] sm:$0xff] %vm257_vm2, %v255_v49 }

// kernel: gat2_forward.6
= control target key start
LH: loop header
LB: loop body
LE: loop exit
PB: predicated region body
PF: predicated region fallthrough
CT: control target
= control target key end

     0   :  { %vm31_vm0 = vcmask 261120   ;;  %v1316_v25 = vmov 0.0|0.0   ;;  %vm1317_vm1 = vmmov 0   ;;  %v1318_v26 = vmov 0.0   ;;  %s1637_s2 = inlined_call_operand.vmem [shape: f32[32,64], index: 2, kind: input, shape index: {}]   ;;  %s1638_s1 = inlined_call_operand.vmem [shape: f32[32,32], index: 1, kind: input, shape index: {}]   ;;  %s1639_s4 = inlined_call_operand.vmem [shape: f32[64,2], index: 4, kind: input, shape index: {}]   ;;  %s1640_s5 = inlined_call_operand.vmem [shape: f32[32,64], index: 5, kind: input, shape index: {}]   ;;  %s1641_s3 = inlined_call_operand.vmem [shape: f32[2,64], index: 3, kind: input, shape index: {}]   ;;  %s1642_s0 = inlined_call_operand.vmem [shape: f32[32,32], index: 0, kind: input, shape index: {}]   ;;  %s1643_s6 = inlined_call_operand.vmem [shape: f32[32,32], index: 6, kind: output, shape index: {}]  }
   0x1   :  { %v27_v0 = vld [vmem:[%s1637_s2] sm:$0xff]  ;;  %v28_v1 = vld [vmem:[%s1637_s2 + $0x8] sm:$0xff]  ;;  %v29_v2 = vld [vmem:[%s1637_s2 + $0x10] sm:$0xff]  ;;  %v1319_v27 = vmov 0   ;;  %vm145_vm2 = vcmask 523264   ;;  %v1320_v45 = vmov 1   ;;  %v337_v48 = vlaneseq }
   0x2   :  { %v1162_v3 = vpack.c.bf16 %v28_v1, %v27_v0  ;;  %v30_v4 = vld [vmem:[%s1637_s2 + $0x18] sm:$0xff]  ;;  %v1372_v5 = vld [vmem:[%s1638_s1] sm:$0xff]  ;;  %v138_v8 = vld [vmem:[%s1639_s4 + $0x8] sm:$0xff]  ;;  %1244 = vset.pattern.permute.xlu0 %v1319_v27  ;;  %1245 = vset.pattern.permute.xlu1 %v1319_v27 }
   0x3   :  { %v1166_v6 = vpack.c.bf16 %v30_v4, %v29_v2  ;;  %1067 = vmatprep.mubr.msk.f32.mxu0 %vm31_vm0, %v1372_v5  ;;  %v137_v7 = vld [vmem:[%s1639_s4] sm:$0xff]  ;;  %v139_v9 = vld [vmem:[%s1639_s4 + $0x10] sm:$0xff]  ;;  %v140_v10 = vld [vmem:[%s1639_s4 + $0x18] sm:$0xff]  ;;  %v338_v49 = vshrl.u32 %v337_v48, 7 }
   0x4   :  { %1163 = vmatprep.subr.bf16.mxu0 %v1162_v3  ;;  %v1170_v11 = vpack.c.bf16 %v138_v8, %v137_v7  ;;  %v1174_v12 = vpack.c.bf16 %v140_v10, %v139_v9  ;;  %v141_v13 = vld [vmem:[%s1639_s4 + $0x20] sm:$0xff]  ;;  %v142_v14 = vld [vmem:[%s1639_s4 + $0x28] sm:$0xff]  ;;  %v1402_v17 = vld [vmem:[%s1638_s1 + $0x10] sm:$0xff] }
   0x5   :  { %1165 = vmatpush3.bf16.msra.mxu0 %v1162_v3  ;;  %v1397_v15 = vld [vmem:[%s1638_s1 + $0x8] sm:$0xff]  ;;  %v1178_v16 = vpack.c.bf16 %v142_v14, %v141_v13  ;;  %v143_v18 = vld [vmem:[%s1639_s4 + $0x30] sm:$0xff]  ;;  %v144_v19 = vld [vmem:[%s1639_s4 + $0x38] sm:$0xff]  ;;  %v339_v50 = vsub.s32 0, %v338_v49  ;;  %v641_v57 = vsub.s32 1, %v338_v49 }
   0x6   :  { %1167 = vmatprep.subr.bf16.mxu0 %v1166_v6  ;;  %1171 = vmatprep.subr.bf16.mxu1 %v1170_v11  ;;  %v1417_v20 = vld [vmem:[%s1638_s1 + $0x18] sm:$0xff]  ;;  %v1182_v21 = vpack.c.bf16 %v144_v19, %v143_v18  ;;  %v1424_v22 = vld [vmem:[%s1640_s5] sm:$0xff]  ;;  %v1429_v23 = vld [vmem:[%s1640_s5 + $0x8] sm:$0xff] }
   0x7   :  { %1173 = vmatpush3.bf16.msra.mxu1 %v1170_v11  ;;  %v1194_v24 = vpack.c.bf16 %v1429_v23, %v1424_v22  ;;  %v1436_v28 = vld [vmem:[%s1640_s5 + $0x10] sm:$0xff]  ;;  %v1441_v29 = vld [vmem:[%s1640_s5 + $0x18] sm:$0xff]  ;;  %vm1449_vm3 = vmpackc.low %vm145_vm2, %vm145_vm2 }
   0x8   :  { %1175 = vmatprep.subr.bf16.mxu1 %v1174_v12  ;;  %v1198_v33 = vpack.c.bf16 %v1441_v29, %v1436_v28  ;;  %v243_v40 = vld [vmem:[%s1641_s3] sm:$0x3]  ;;  %v1496_v53 = vld [vmem:[%s1642_s0 + $0x8] sm:$0xff]  ;;  %v1512_v0 = vld [vmem:[%s1642_s0 + $0x18] sm:$0xff] }
   0x9   :  { %1169 = vmatpush3.bf16.msra.mxu0 %v1166_v6  ;;  %vm134_vm4 = vcmp.gt.f32.partialorder %v1496_v53, 0.0  ;;  %v1502_v56 = vld [vmem:[%s1642_s0] sm:$0xff]  ;;  %v1519_v6 = vld [vmem:[%s1642_s0 + $0x10] sm:$0xff]  ;;  %vm136_vm9 = vcmp.gt.f32.partialorder %v1512_v0, 0.0  ;;  %s1321_s0 = smov 96  }
   0xa   :  { %1186 = vmatprep.subr.bf16.mxu0 %v1316_v25  ;;  %vm133_vm6 = vcmp.gt.f32.partialorder %v1502_v56, 0.0  ;;  %vm135_vm10 = vcmp.gt.f32.partialorder %v1519_v6, 0.0 }
   0xb   :  { %1177 = vmatpush3.bf16.msra.mxu1 %v1174_v12 }
   0xc   :  { %1068 = vmatmul.mubr.msk.f32.vlgmr.msra.gmra.mrb[0].mxu0 %vm31_vm0, %v1397_v15  ;;  %1179 = vmatprep.subr.bf16.mxu1 %v1178_v16 }
   0xd   :  { %1070 = vmatprep.mubr.msk.f32.mxu0 %vm31_vm0, %v1402_v17 }
   0xf   :  { %1181 = vmatpush3.bf16.msra.mxu1 %v1178_v16 }
  0x10   :  { %1071 = vmatmul.mubr.msk.f32.gmra.mrb[2].mxu0 %vm31_vm0, %v1417_v20  ;;  %1183 = vmatprep.subr.bf16.mxu1 %v1182_v21 }
  0x11   :  { %1103 = vmatprep.mubr.msk.f32.mxu0 %vm1317_vm1, %v1318_v26 }
  0x13   :  { %1185 = vmatpush3.bf16.msra.mxu1 %v1182_v21 }
  0x14   :  { %1195 = vmatprep.subr.bf16.mxu1 %v1194_v24 }
  0xdf   :  { %v1443_v30 = vpop.f32.mrb[0].mxu0 }
  0xe0   :  { %v1445_v31 = vpop.f32.mrb[1].mxu0 }
  0xe1   :  { %v1258_v34 = vpack.i.bf16 %v1443_v30, %v1445_v31  ;;  %v1187_v35 = vpack.c.bf16 %v1443_v30, %v1445_v31  ;;  %1089 = vmatprep.mubr.msk.f32.mxu1 %vm145_vm2, %v1445_v31 }
  0xe2   :  { %1090 = vmatmul.mubr.msk.f32.vlgmr.msra.gmra.mrb[0].mxu1 %vm145_vm2, %v1443_v30 }
  0xe3   :  { %1197 = vmatpush3.bf16.msra.mxu1 %v1194_v24  ;;  %v1463_v36 = vpop.f32.mrb[2].mxu0  ;;  %1189 = vmatpush3.bf16.xpose.msk.msra.mxu0 %vm1449_vm3, %v1187_v35 }
  0xe4   :  { %v1467_v37 = vpop.f32.mrb[3].mxu0  ;;  %1199 = vmatprep.subr.bf16.mxu1 %v1198_v33  ;;  %1190 = vmatprep.subr.bf16.mxu0 %v1316_v25 }
  0xe5   :  { %v1263_v38 = vpack.i.bf16 %v1463_v36, %v1467_v37  ;;  %v1191_v39 = vpack.c.bf16 %v1463_v36, %v1467_v37  ;;  %1092 = vmatprep.mubr.msk.f32.mxu1 %vm145_vm2, %v1467_v37 }
  0xe6   :  { %1093 = vmatmul.mubr.msk.f32.gmra.mrb[2].mxu1 %vm145_vm2, %v1463_v36 }
  0xe7   :  { %1201 = vmatpush3.bf16.msra.mxu1 %v1198_v33  ;;  %1114 = vmatprep.mubr.msk.f32.mxu1 %vm31_vm0, %v1372_v5 }
  0xe8   :  { %1203 = vmatprep.subr.bf16.mxu1 %v1187_v35 }
  0xea   :  { %1115 = vmatmul.mubr.msk.f32.vlgmr.msra.gmra.mrb[4].mxu1 %vm31_vm0, %v1397_v15 }
  0xeb   :  { %1205 = vmatpush3.bf16.msra.mxu1 %v1187_v35  ;;  %1193 = vmatpush3.bf16.xpose.msk.msra.mxu0 %vm1449_vm3, %v1191_v39 }
  0xec   :  { %1207 = vmatprep.subr.bf16.mxu1 %v1191_v39  ;;  %1117 = vmatprep.mubr.msk.f32.mxu1 %vm31_vm0, %v1402_v17 }
  0xee   :  { %1118 = vmatmul.mubr.msk.f32.gmra.mrb[6].mxu1 %vm31_vm0, %v1417_v20 }
  0xef   :  { %1209 = vmatpush3.bf16.msra.mxu1 %v1191_v39 }
  0xf2   :  { %1104 = vmatmul.mubr.msk.f32.vlgmr.msra.gmra.mrb[4].mxu0 %vm145_vm2, %v243_v40 }
  0xf3   :  { %1142 = vmatprep.mubr.msk.f32.mxu0 %vm31_vm0, %v1372_v5 }
 0x1b5   :  { %v1091_v41 = vpop.f32.mrb[0].mxu1 }
 0x1b6   :  { %324 = vperm.xlu0 %1244, %v1091_v41   ;;  %v224_v42 = vpop.f32.mrb[1].mxu1 }
 0x1b9   :  { %v1094_v43 = vpop.f32.mrb[2].mxu1 }
 0x1ba   :  { %319 = vperm.xlu0 %1244, %v224_v42   ;;  %334 = vperm.xlu1 %1245, %v1094_v43   ;;  %v234_v44 = vpop.f32.mrb[3].mxu1 }
 0x1be   :  { %1247 = vset.pattern.permute.xlu0 %v1320_v45  ;;  %329 = vperm.xlu1 %1245, %v234_v44  }
 0x1bf   :  { %632 = vperm.xlu0 %1247, %v234_v44  }
 0x1c2   :  { %1246 = vset.pattern.permute.xlu1 %v1320_v45 }
 0x1c3   :  { %628 = vperm.xlu0 %1247, %v1091_v41   ;;  %636 = vperm.xlu1 %1246, %v1094_v43  }
 0x1c5   :  { %v313_v46 = vpop.f32.mrb[4].mxu0 }
 0x1c6   :  { %v1105_v47 = vpop.f32.mrb[5].mxu0  ;;  %v340_v51 = vrot.slane %v313_v46, %v339_v50  ;;  %v642_v4 = vrot.slane %v313_v46, %v641_v57  ;;  %v1253_v57 = vpack.i.bf16 %v1441_v29, %v1436_v28 }
 0x1c7   :  { %624 = vperm.xlu1 %1246, %v224_v42  }
 0x235   :  { %v325_v52 = vpop.permute.xlu0 %324 }
 0x236   :  { %v342_v54 = vadd.f32 %v340_v51, %v325_v52 }
 0x238   :  { %v350_v55 = vmul.f32 0.2, %v342_v54  ;;  %vm346_vm5 = vcmp.gt.f32.partialorder %v342_v54, 0.0 }
 0x239   :  { %v320_v58 = vpop.permute.xlu0 %319  ;;  %v335_v59 = vpop.permute.xlu1 %334 }
 0x23a   :  { %v341_v60 = vadd.f32 %v340_v51, %v320_v58  ;;  %v344_v61 = vadd.f32 %v340_v51, %v335_v59  ;;  %v354_v62 = vsel %vm346_vm5, %v342_v54, %v350_v55  ;;  %v1248_v58 = vpack.i.bf16 %v1429_v23, %v1424_v22 }
 0x23b   :  { %v1506_v63 = vsel %vm134_vm4, %v354_v62, -1e+30 }
 0x23c   :  { %v349_v1 = vmul.f32 0.2, %v341_v60  ;;  %v352_v2 = vmul.f32 0.2, %v344_v61  ;;  %v364_v3 = vsel %vm31_vm0, %v1506_v63, -inf  ;;  %vm345_vm7 = vcmp.gt.f32.partialorder %v341_v60, 0.0 }
 0x23d   :  { %v330_v5 = vpop.permute.xlu1 %329  ;;  %365 = vmax.xlane.f32.xlu0 %v364_v3  ;;  %vm348_vm8 = vcmp.gt.f32.partialorder %v344_v61, 0.0 }
 0x23e   :  { %v343_v7 = vadd.f32 %v340_v51, %v330_v5  ;;  %v633_v8 = vpop.permute.xlu0 %632  ;;  %v353_v9 = vsel %vm345_vm7, %v341_v60, %v349_v1  ;;  %v356_v10 = vsel %vm348_vm8, %v344_v61, %v352_v2 }
 0x23f   :  { %v645_v11 = vadd.f32 %v642_v4, %v633_v8  ;;  %v357_v12 = vsel %vm133_vm6, %v353_v9, -1e+30  ;;  %v360_v18 = vsel %vm136_vm9, %v356_v10, -1e+30 }
 0x240   :  { %v351_v13 = vmul.f32 0.2, %v343_v7  ;;  %v361_v14 = vsel %vm31_vm0, %v357_v12, -inf  ;;  %vm347_vm11 = vcmp.gt.f32.partialorder %v343_v7, 0.0  ;;  %v370_v35 = vsel %vm31_vm0, %v360_v18, -inf }
 0x241   :  { %v653_v16 = vmul.f32 0.2, %v645_v11  ;;  %362 = vmax.xlane.f32.xlu1 %v361_v14  ;;  %vm649_vm12 = vcmp.gt.f32.partialorder %v645_v11, 0.0 }
 0x242   :  { %v629_v19 = vpop.permute.xlu0 %628  ;;  %v637_v21 = vpop.permute.xlu1 %636  ;;  %v355_v24 = vsel %vm347_vm11, %v343_v7, %v351_v13 }
 0x243   :  { %v644_v25 = vadd.f32 %v642_v4, %v629_v19  ;;  %v646_v26 = vadd.f32 %v642_v4, %v637_v21  ;;  %v359_v27 = vsel %vm135_vm10, %v355_v24, -1e+30  ;;  %v657_v32 = vsel %vm649_vm12, %v645_v11, %v653_v16 }
 0x244   :  { %v367_v33 = vsel %vm31_vm0, %v359_v27, -inf  ;;  %v661_v39 = vsel %vm135_vm10, %v657_v32, -1e+30 }
 0x245   :  { %v652_v40 = vmul.f32 0.2, %v644_v25  ;;  %v654_v41 = vmul.f32 0.2, %v646_v26  ;;  %368 = vmax.xlane.f32.xlu0 %v367_v33  ;;  %371 = vmax.xlane.f32.xlu1 %v370_v35  ;;  %vm650_vm13 = vcmp.gt.f32.partialorder %v646_v26, 0.0  ;;  %vm648_vm14 = vcmp.gt.f32.partialorder %v644_v25, 0.0 }
 0x246   :  { %v625_v42 = vpop.permute.xlu1 %624  ;;  %v669_v46 = vsel %vm31_vm0, %v661_v39, -inf }
 0x247   :  { %v643_v43 = vadd.f32 %v642_v4, %v625_v42  ;;  %v658_v44 = vsel %vm650_vm13, %v646_v26, %v654_v41  ;;  %v656_v45 = vsel %vm648_vm14, %v644_v25, %v652_v40 }
 0x248   :  { %v662_v47 = vsel %vm136_vm9, %v658_v44, -1e+30  ;;  %v660_v50 = vsel %vm134_vm4, %v656_v45, -1e+30 }
 0x249   :  { %v651_v48 = vmul.f32 0.2, %v643_v43  ;;  %670 = vmax.xlane.f32.xlu0 %v669_v46  ;;  %v672_v49 = vsel %vm31_vm0, %v662_v47, -inf  ;;  %vm647_vm15 = vcmp.gt.f32.partialorder %v643_v43, 0.0  ;;  %v666_v55 = vsel %vm31_vm0, %v660_v50, -inf }
 0x24a   :  { %673 = vmax.xlane.f32.xlu1 %v672_v49 }
 0x24b   :  { %v655_v51 = vsel %vm647_vm15, %v643_v43, %v651_v48 }
 0x24c   :  { %v659_v52 = vsel %vm133_vm6, %v655_v51, -1e+30 }
 0x24d   :  { %v663_v54 = vsel %vm31_vm0, %v659_v52, -inf }
 0x24e   :  { %664 = vmax.xlane.f32.xlu0 %v663_v54  ;;  %667 = vmax.xlane.f32.xlu1 %v666_v55 }
 0x25f   :  { %1254 = vrot.lane.b32.xlu1 %v1253_v57, %s1321_s0 }
 0x264   :  { %1249 = vrot.lane.b32.xlu0 %v1248_v58, %s1321_s0 }
 0x2ca   :  { %v366_v59 = vpop.xlane.xlu0 %365 }
 0x2cb   :  { %v374_v60 = vsub.f32 %v1506_v63, %v366_v59 }
 0x2cd   :  { %v379_v61 = vmul.f32 1.442695, %v374_v60 }
 0x2ce   :  { %v363_v62 = vpop.xlane.xlu1 %362 }
 0x2cf   :  { %1268 = vpow2.f32 %v379_v61  ;;  %v373_v1 = vsub.f32 %v357_v12, %v363_v62 }
 0x2d1   :  { %v377_v2 = vmul.f32 1.442695, %v373_v1 }
 0x2d2   :  { %v369_v3 = vpop.xlane.xlu0 %368  ;;  %v372_v4 = vpop.xlane.xlu1 %371 }
 0x2d3   :  { %1270 = vpow2.f32 %v377_v2  ;;  %v375_v28 = vsub.f32 %v359_v27, %v369_v3  ;;  %v376_v5 = vsub.f32 %v360_v18, %v372_v4 }
 0x2d5   :  { %v381_v9 = vmul.f32 1.442695, %v375_v28  ;;  %v383_v23 = vmul.f32 1.442695, %v376_v5 }
 0x2d6   :  { %v671_v29 = vpop.xlane.xlu0 %670 }
 0x2d7   :  { %v674_v7 = vpop.xlane.xlu1 %673  ;;  %v677_v63 = vsub.f32 %v661_v39, %v671_v29  ;;  %1272 = vpow2.f32 %v381_v9 }
 0x2d8   :  { %v678_v19 = vsub.f32 %v662_v47, %v674_v7  ;;  %1274 = vpow2.f32 %v383_v23 }
 0x2d9   :  { %v1269_v8 = vpop.eup %1268  ;;  %v683_v25 = vmul.f32 1.442695, %v677_v63 }
 0x2da   :  { %v1553_v22 = vsel %vm134_vm4, %v1269_v8, 0.0  ;;  %v685_v40 = vmul.f32 1.442695, %v678_v19 }
 0x2db   :  { %v665_v10 = vpop.xlane.xlu0 %664  ;;  %v668_v11 = vpop.xlane.xlu1 %667  ;;  %v392_v12 = vsel %vm31_vm0, %v1553_v22, 0.0 }
 0x2dc   :  { %v675_v13 = vsub.f32 %v659_v52, %v665_v10  ;;  %v676_v14 = vsub.f32 %v660_v50, %v668_v11  ;;  %393 = vadd.xlane.f32.xlu1 %v392_v12 }
 0x2dd   :  { %v1271_v16 = vpop.eup %1270 }
 0x2de   :  { %v679_v18 = vmul.f32 1.442695, %v675_v13  ;;  %v681_v21 = vmul.f32 1.442695, %v676_v14  ;;  %v385_v24 = vsel %vm133_vm6, %v1271_v16, 0.0 }
 0x2df   :  { %v389_v26 = vsel %vm31_vm0, %v385_v24, 0.0  ;;  %v1250_v27 = vpop.permute.xlu0 %1249  ;;  %v1255_v32 = vpop.permute.xlu1 %1254 }
 0x2e0   :  { %1276 = vpow2.f32 %v679_v18  ;;  %390 = vadd.xlane.f32.xlu0 %v389_v26  ;;  %v1252_v33 = vunpack.i.h.bf16 %v1250_v27  ;;  %v1251_v35 = vunpack.i.l.bf16 %v1250_v27  ;;  %v1257_v39 = vunpack.i.h.bf16 %v1255_v32 }
 0x2e1   :  { %1278 = vpow2.f32 %v681_v21  ;;  %v1256_v41 = vunpack.i.l.bf16 %v1255_v32  ;;  %v1273_v44 = vpop.eup %1272 }
 0x2e2   :  { %v1210_v42 = vpack.c.bf16 %v1252_v33, %v1251_v35  ;;  %1280 = vpow2.f32 %v683_v25  ;;  %v1275_v45 = vpop.eup %1274  ;;  %v1573_v52 = vsel %vm135_vm10, %v1273_v44, 0.0 }
 0x2e3   :  { %v1214_v43 = vpack.c.bf16 %v1257_v39, %v1256_v41  ;;  %1282 = vpow2.f32 %v685_v40  ;;  %v1579_v53 = vsel %vm136_vm9, %v1275_v45, 0.0 }
 0x2e4   :  { %1211 = vmatprep.subr.bf16.mxu0 %v1210_v42  ;;  %v398_v55 = vsel %vm31_vm0, %v1579_v53, 0.0 }
 0x2e5   :  { %1213 = vmatpush3.bf16.msra.mxu0 %v1210_v42 }
 0x2e6   :  { %1215 = vmatprep.subr.bf16.mxu0 %v1214_v43 }
 0x2e9   :  { %1217 = vmatpush3.bf16.msra.mxu0 %v1214_v43 }
 0x2ea   :  { %v1277_v46 = vpop.eup %1276 }
 0x2eb   :  { %v1279_v47 = vpop.eup %1278  ;;  %v687_v48 = vsel %vm133_vm6, %v1277_v46, 0.0 }
 0x2ec   :  { %v691_v49 = vsel %vm31_vm0, %v687_v48, 0.0  ;;  %v1565_v50 = vsel %vm134_vm4, %v1279_v47, 0.0  ;;  %1143 = vmatmul.mubr.msk.f32.vlgmr.msra.gmra.mrb[6].mxu0 %vm31_vm0, %v1397_v15  ;;  %v1281_v56 = vpop.eup %1280  ;;  %v395_v15 = vsel %vm31_vm0, %v1573_v52, 0.0 }
 0x2ed   :  { %692 = vadd.xlane.f32.xlu0 %v691_v49  ;;  %v694_v51 = vsel %vm31_vm0, %v1565_v50, 0.0  ;;  %1145 = vmatprep.mubr.msk.f32.mxu0 %vm31_vm0, %v1402_v17  ;;  %v1283_v54 = vpop.eup %1282  ;;  %v1589_v17 = vsel %vm135_vm10, %v1281_v56, 0.0 }
 0x2ee   :  { %695 = vadd.xlane.f32.xlu1 %v694_v51  ;;  %v1593_v57 = vsel %vm136_vm9, %v1283_v54, 0.0  ;;  %v697_v58 = vsel %vm31_vm0, %v1589_v17, 0.0 }
 0x2f0   :  { %1146 = vmatmul.mubr.msk.f32.gmra.mrb[8].mxu0 %vm31_vm0, %v1417_v20  ;;  %v700_v20 = vsel %vm31_vm0, %v1593_v57, 0.0 }
 0x2f1   :  { %396 = vadd.xlane.f32.xlu0 %v395_v15 }
 0x2f2   :  { %399 = vadd.xlane.f32.xlu1 %v398_v55 }
 0x2f5   :  { %698 = vadd.xlane.f32.xlu0 %v697_v58 }
 0x2f6   :  { %701 = vadd.xlane.f32.xlu1 %v700_v20 }
 0x307   :  { %1259 = vrot.lane.b32.xlu1 %v1258_v34, %s1321_s0 }
 0x30b   :  { %1264 = vrot.lane.b32.xlu0 %v1263_v38, %s1321_s0 }
 0x369   :  { %v394_v0 = vpop.xlane.xlu1 %393 }
 0x36a   :  { %v402_v6 = vmax.f32 %v394_v0, 1e-20 }
 0x36c   :  { %1284 = vrcp.f32 %v402_v6 }
 0x36d   :  { %v391_v59 = vpop.xlane.xlu0 %390 }
 0x36e   :  { %v401_v60 = vmax.f32 %v391_v59, 1e-20 }
 0x370   :  { %1286 = vrcp.f32 %v401_v60 }
 0x376   :  { %v1285_v61 = vpop.eup %1284 }
 0x377   :  { %v408_v30 = vmul.f32 %v1285_v61, %v1553_v22 }
 0x37a   :  { %v1287_v62 = vpop.eup %1286  ;;  %v693_v1 = vpop.xlane.xlu0 %692 }
 0x37b   :  { %v703_v2 = vmax.f32 %v693_v1, 1e-20  ;;  %v696_v3 = vpop.xlane.xlu1 %695  ;;  %v406_v4 = vmul.f32 %v1287_v62, %v385_v24 }
 0x37c   :  { %v704_v37 = vmax.f32 %v696_v3, 1e-20 }
 0x37d   :  { %1288 = vrcp.f32 %v703_v2  ;;  %1128 = vmatprep.mubr.msk.f32.mxu1 %vm31_vm0, %v406_v4 }
 0x37e   :  { %v397_v31 = vpop.xlane.xlu0 %396  ;;  %1129 = vmatmul.mubr.msk.f32.vlgmr.msra.gmra.mrb[4].mxu1 %vm31_vm0, %v408_v30 }
 0x37f   :  { %v403_v34 = vmax.f32 %v397_v31, 1e-20  ;;  %v400_v36 = vpop.xlane.xlu1 %399 }
 0x380   :  { %v404_v38 = vmax.f32 %v400_v36, 1e-20 }
 0x381   :  { %1290 = vrcp.f32 %v403_v34 }
 0x382   :  { %1292 = vrcp.f32 %v404_v38  ;;  %v699_v28 = vpop.xlane.xlu0 %698 }
 0x383   :  { %v705_v29 = vmax.f32 %v699_v28, 1e-20  ;;  %v702_v5 = vpop.xlane.xlu1 %701  ;;  %1294 = vrcp.f32 %v704_v37 }
 0x384   :  { %v706_v7 = vmax.f32 %v702_v5, 1e-20 }
 0x385   :  { %1296 = vrcp.f32 %v705_v29 }
 0x386   :  { %1298 = vrcp.f32 %v706_v7  ;;  %v1265_v8 = vpop.permute.xlu0 %1264 }
 0x387   :  { %v1289_v9 = vpop.eup %1288  ;;  %v1267_v22 = vunpack.i.h.bf16 %v1265_v8  ;;  %v1260_v23 = vpop.permute.xlu1 %1259  ;;  %v1266_v63 = vunpack.i.l.bf16 %v1265_v8 }
 0x388   :  { %v1262_v10 = vunpack.i.h.bf16 %v1260_v23  ;;  %v1261_v11 = vunpack.i.l.bf16 %v1260_v23  ;;  %v708_v12 = vmul.f32 %v1289_v9, %v687_v48 }
 0x389   :  { %v1222_v19 = vpack.c.bf16 %v1267_v22, %v1266_v63 }
 0x38a   :  { %v1218_v13 = vpack.c.bf16 %v1262_v10, %v1261_v11  ;;  %1156 = vmatprep.mubr.msk.f32.mxu0 %vm31_vm0, %v708_v12 }
 0x38b   :  { %v1291_v14 = vpop.eup %1290 }
 0x38c   :  { %v1293_v16 = vpop.eup %1292  ;;  %1219 = vmatprep.subr.bf16.mxu0 %v1218_v13  ;;  %1226 = vmatprep.subr.bf16.mxu1 %v1218_v13  ;;  %v410_v18 = vmul.f32 %v1291_v14, %v1573_v52 }
 0x38d   :  { %1221 = vmatpush3.bf16.msra.mxu0 %v1218_v13  ;;  %1228 = vmatpush3.bf16.msra.mxu1 %v1218_v13  ;;  %v412_v21 = vmul.f32 %v1293_v16, %v1579_v53  ;;  %v1295_v24 = vpop.eup %1294 }
 0x38e   :  { %1223 = vmatprep.subr.bf16.mxu0 %v1222_v19  ;;  %1227 = vmatprep.subr.bf16.mxu1 %v1222_v19  ;;  %v710_v33 = vmul.f32 %v1295_v24, %v1565_v50 }
 0x38f   :  { %v1297_v25 = vpop.eup %1296  ;;  %1131 = vmatprep.mubr.msk.f32.mxu1 %vm31_vm0, %v410_v18 }
 0x390   :  { %v1299_v26 = vpop.eup %1298  ;;  %1132 = vmatmul.mubr.msk.f32.gmra.mrb[6].mxu1 %vm31_vm0, %v412_v21  ;;  %v712_v27 = vmul.f32 %v1297_v25, %v1589_v17 }
 0x391   :  { %v714_v32 = vmul.f32 %v1299_v26, %v1593_v57  ;;  %1225 = vmatpush3.bf16.msra.mxu0 %v1222_v19  ;;  %1229 = vmatpush3.bf16.msra.mxu1 %v1222_v19 }
 0x392   :  { %1159 = vmatprep.mubr.msk.f32.mxu1 %vm31_vm0, %v712_v27 }
 0x394   :  { %1157 = vmatmul.mubr.msk.f32.vlgmr.msra.gmra.mrb[6].mxu0 %vm31_vm0, %v710_v33  ;;  %1160 = vmatmul.mubr.msk.f32.vlgmr.msra.gmra.mrb[8].mxu1 %vm31_vm0, %v714_v32 }
 0x3c3   :  { %v1147_v35 = vpop.f32.mrb[8].mxu0 }
 0x3c4   :  { %v807_v39 = vpop.f32.mrb[9].mxu0 }
 0x451   :  { %v1130_v40 = vpop.f32.mrb[4].mxu1 }
 0x452   :  { %v580_v41 = vpop.f32.mrb[5].mxu1  ;;  %v604_v42 = vmin.f32 %v1130_v40, 0.0  ;;  %vm600_vm1 = vcmp.gt.f32.partialorder %v1130_v40, 0.0 }
 0x453   :  { %v603_v43 = vmin.f32 %v580_v41, 0.0  ;;  %vm599_vm2 = vcmp.gt.f32.partialorder %v580_v41, 0.0 }
 0x454   :  { %v609_v44 = vmul.f32 1.442695, %v604_v42 }
 0x455   :  { %v607_v45 = vmul.f32 1.442695, %v603_v43 }
 0x456   :  { %1300 = vpow2.f32 %v609_v44 }
 0x457   :  { %1302 = vpow2.f32 %v607_v45 }
 0x460   :  { %v1301_v61 = vpop.eup %1300 }
 0x461   :  { %v1303_v62 = vpop.eup %1302  ;;  %v987_v1 = vadd.f32 -1.0, %v1301_v61 }
 0x462   :  { %v986_v2 = vadd.f32 -1.0, %v1303_v62 }
 0x463   :  { %v1133_v46 = vpop.f32.mrb[6].mxu1  ;;  %v620_v34 = vsel %vm600_vm1, %v1130_v40, %v987_v1 }
 0x464   :  { %v606_v47 = vmin.f32 %v1133_v46, 0.0  ;;  %v590_v48 = vpop.f32.mrb[7].mxu1  ;;  %v619_v36 = vsel %vm599_vm2, %v580_v41, %v986_v2  ;;  %vm602_vm3 = vcmp.gt.f32.partialorder %v1133_v46, 0.0 }
 0x465   :  { %v605_v49 = vmin.f32 %v590_v48, 0.0  ;;  %vm601_vm5 = vcmp.gt.f32.partialorder %v590_v48, 0.0 }
 0x466   :  { %v613_v50 = vmul.f32 1.442695, %v606_v47 }
 0x467   :  { %v611_v51 = vmul.f32 1.442695, %v605_v49  ;;  %v1158_v52 = vpop.f32.mrb[6].mxu0  ;;  %v1161_v56 = vpop.f32.mrb[8].mxu1 }
 0x468   :  { %v930_v53 = vmin.f32 %v1158_v52, 0.0  ;;  %v922_v54 = vadd.f32 %v1161_v56, %v1147_v35  ;;  %v906_v15 = vpop.f32.mrb[7].mxu0  ;;  %v916_v55 = vpop.f32.mrb[9].mxu1  ;;  %1304 = vpow2.f32 %v613_v50  ;;  %vm926_vm4 = vcmp.gt.f32.partialorder %v1158_v52, 0.0 }
 0x469   :  { %v929_v17 = vmin.f32 %v906_v15, 0.0  ;;  %v917_v57 = vadd.f32 %v916_v55, %v807_v39  ;;  %1306 = vpow2.f32 %v611_v51  ;;  %vm925_vm6 = vcmp.gt.f32.partialorder %v906_v15, 0.0 }
 0x46a   :  { %v935_v58 = vmul.f32 1.442695, %v930_v53  ;;  %v932_v20 = vmin.f32 %v922_v54, 0.0  ;;  %vm928_vm7 = vcmp.gt.f32.partialorder %v922_v54, 0.0 }
 0x46b   :  { %v933_v0 = vmul.f32 1.442695, %v929_v17  ;;  %v931_v6 = vmin.f32 %v917_v57, 0.0  ;;  %vm927_vm8 = vcmp.gt.f32.partialorder %v917_v57, 0.0 }
 0x46c   :  { %1308 = vpow2.f32 %v935_v58  ;;  %v939_v59 = vmul.f32 1.442695, %v932_v20 }
 0x46d   :  { %1310 = vpow2.f32 %v933_v0  ;;  %v937_v60 = vmul.f32 1.442695, %v931_v6 }
 0x46e   :  { %1312 = vpow2.f32 %v939_v59 }
 0x46f   :  { %1314 = vpow2.f32 %v937_v60 }
 0x472   :  { %v1305_v3 = vpop.eup %1304 }
 0x473   :  { %v1307_v4 = vpop.eup %1306  ;;  %v989_v37 = vadd.f32 -1.0, %v1305_v3 }
 0x474   :  { %v988_v29 = vadd.f32 -1.0, %v1307_v4 }
 0x475   :  { %v622_v10 = vsel %vm602_vm3, %v1133_v46, %v989_v37 }
 0x476   :  { %v1309_v30 = vpop.eup %1308  ;;  %v621_v13 = vsel %vm601_vm5, %v590_v48, %v988_v29 }
 0x477   :  { %v1311_v31 = vpop.eup %1310  ;;  %v999_v38 = vadd.f32 -1.0, %v1309_v30 }
 0x478   :  { %v1313_v28 = vpop.eup %1312  ;;  %v998_v5 = vadd.f32 -1.0, %v1311_v31 }
 0x479   :  { %v1315_v7 = vpop.eup %1314  ;;  %v946_v8 = vsel %vm926_vm4, %v1158_v52, %v999_v38  ;;  %v1001_v9 = vadd.f32 -1.0, %v1313_v28 }
 0x47a   :  { %v950_v22 = vadd.f32 %v946_v8, %v620_v34  ;;  %v945_v23 = vsel %vm925_vm6, %v906_v15, %v998_v5  ;;  %v1000_v63 = vadd.f32 -1.0, %v1315_v7 }
 0x47b   :  { %v948_v11 = vsel %vm928_vm7, %v922_v54, %v1001_v9  ;;  %v949_v12 = vadd.f32 %v945_v23, %v619_v36 }
 0x47c   :  { %v954_v14 = vmul.f32 0.5, %v950_v22  ;;  %v952_v16 = vadd.f32 %v948_v11, %v622_v10  ;;  %v947_v19 = vsel %vm927_vm8, %v917_v57, %v1000_v63 }
 0x47d   :  { %v953_v18 = vmul.f32 0.5, %v949_v12  ;;  %v951_v21 = vadd.f32 %v947_v19, %v621_v13 }
 0x47e   :  { %958 = vst.msk [vmem:[%s1643_s6 + $0x8] sm:$0xff] %vm31_vm0, %v954_v14  ;;  %v956_v24 = vmul.f32 0.5, %v952_v16 }
 0x47f   :  { %957 = vst.msk [vmem:[%s1643_s6] sm:$0xff] %vm31_vm0, %v953_v18  ;;  %v955_v25 = vmul.f32 0.5, %v951_v21 }
 0x480   :  { %960 = vst.msk [vmem:[%s1643_s6 + $0x18] sm:$0xff] %vm31_vm0, %v956_v24 }
 0x481   :  { %959 = vst.msk [vmem:[%s1643_s6 + $0x10] sm:$0xff] %vm31_vm0, %v955_v25 }

</bundles_post_ra>
